<compile_context>
chip_gen: v5e
topology: v5e:2x2
jax: 0.10.0
libtpu: 0.0.40
codegen_flags: <defaults>
</compile_context>

<pallas_src>
import jax
import jax.numpy as jnp
from jax.experimental import pallas as pl
from jax.experimental.pallas import tpu as pltpu

# ---- small T5 config (synthetic stand-in) ----
D_MODEL = 32
D_KV = 8
N_HEADS = 4
INNER = N_HEADS * D_KV          # = 32
LN_EPS = 1e-6


def t5_self_attn_kernel(h_ref, bias_ref, wqkv_ref, wo_ref, lnw_ref, out_ref):
    """Whole batch in one grid step.

    h_ref:    (B*S, D)       hidden states (pre-LayerNorm; also the residual)
    bias_ref: (1, H, S, S)   position bias (attention mask already folded in)
    wqkv_ref: (D, 3*INNER)   bf16, columns = [wq | wk | wv], each head-major
    wo_ref:   (INNER, D)     bf16, rows head-major
    lnw_ref:  (1, D)         T5LayerNorm scale
    out_ref:  (B*S, D)       hidden_states + attention output (residual)
    """
    _, H, S, _ = bias_ref.shape
    BS, D = h_ref.shape
    B = BS // S
    INNER_ = wqkv_ref.shape[1] // 3
    KV = INNER_ // H

    x = h_ref[...]                                           # (B*S, D)

    # --- T5LayerNorm (RMS norm: no mean subtraction, no bias), f32 math ---
    xf = x.astype(jnp.float32)
    var = jnp.mean(xf * xf, axis=-1, keepdims=True)
    norm_x = xf * jax.lax.rsqrt(var + LN_EPS) * lnw_ref[...].astype(jnp.float32)

    # --- fused q/k/v projection: ONE MXU matmul, bf16 operands, f32 acc ---
    qkv = jnp.dot(norm_x.astype(jnp.bfloat16), wqkv_ref[...],
                  preferred_element_type=jnp.float32)        # (B*S, 3*INNER)

    def split_heads(comp):
        # columns [comp*INNER : (comp+1)*INNER] are head-major (h, kv)
        blk = qkv[:, comp * INNER_:(comp + 1) * INNER_]      # (B*S, INNER)
        blk = blk.reshape(B, S, H, KV)
        return jnp.transpose(blk, (0, 2, 1, 3)).reshape(B * H, S, KV)

    qh = split_heads(0).astype(jnp.bfloat16)                 # (B*H, S, Kv)
    kh = split_heads(1).astype(jnp.bfloat16)
    vh = split_heads(2).astype(jnp.bfloat16)

    # --- attention scores + position bias, softmax math in f32 ---
    scores = jnp.einsum('gqk,gsk->gqs', qh, kh,
                        preferred_element_type=jnp.float32)  # (B*H, S, S)
    bias_g = jnp.broadcast_to(bias_ref[...].astype(jnp.float32),
                              (B, H, S, S)).reshape(B * H, S, S)
    scores = scores + bias_g
    m = jnp.maximum(jnp.max(scores, axis=-1, keepdims=True), -1e30)   # mask-safe
    e = jnp.exp(scores - m)                                  # f32 (v5e-safe EUP)
    denom = jnp.maximum(jnp.sum(e, axis=-1, keepdims=True), 1e-30)    # NaN guard
    # TODO(synk): attention-weight dropout / head_mask skipped (eval semantics).

    # --- PV with UNnormalized weights; normalize the (much smaller) ctx ---
    ctx = jnp.einsum('gqs,gsk->gqk', e.astype(jnp.bfloat16), vh,
                     preferred_element_type=jnp.float32)     # (B*H, S, Kv)
    ctx = ctx * pl.reciprocal(denom, approx=True)            # EUP slot

    # --- gather heads onto the lane axis in-vreg, ONE output projection ---
    ctx_2d = jnp.transpose(ctx.reshape(B, H, S, KV),
                           (0, 2, 1, 3)).reshape(BS, INNER_)  # (B*S, INNER)
    attn = jnp.dot(ctx_2d.astype(jnp.bfloat16), wo_ref[...],
                   preferred_element_type=jnp.float32)       # (B*S, D)

    # residual connection (layer dropout is identity in eval mode)
    out_ref[...] = (xf + attn).astype(out_ref.dtype)


def t5_layer_self_attention(hidden, position_bias, params):
    B, S, D = hidden.shape
    H, Kv = N_HEADS, D_KV

    # Fuse projection weights column-wise and pre-cast MXU operands to bf16.
    wqkv = jnp.concatenate(
        [params["wq"], params["wk"], params["wv"]], axis=1).astype(jnp.bfloat16)
    wo = params["wo"].astype(jnp.bfloat16)                   # (INNER, D)
    lnw = params["lnw"]                                      # (1, D)

    # Fold batch/seq so the kernel sees one contiguous (B*S, D) slab.
    hidden_2d = hidden.reshape(B * S, D)

    flops = (2 * B * S * D * 3 * INNER          # fused q/k/v projection
             + 2 * 2 * B * H * S * S * Kv       # scores + PV matmuls
             + 2 * B * S * INNER * D            # fused output projection
             + B * H * S * Kv                   # deferred softmax scaling
             + 8 * B * S * D)                   # layernorm / residual
    transcendentals = B * H * S * S + B * S + B * H * S      # exp + rsqrt + recip
    bytes_accessed = (4 * 2 * B * S * D                      # hidden in + out (f32)
                      + 4 * H * S * S                        # bias (f32)
                      + 2 * (D * 3 * INNER + INNER * D)      # bf16 weights
                      + 4 * D)                               # layernorm scale

    out_2d = pl.pallas_call(
        t5_self_attn_kernel,
        out_shape=jax.ShapeDtypeStruct((B * S, D), hidden.dtype),
        grid_spec=pltpu.PrefetchScalarGridSpec(
            num_scalar_prefetch=0,
            # Single grid step: on single-TC v5e/v6e the old grid=(B,) loop was
            # pure per-step overhead at this size; at real sizes re-introduce a
            # 'parallel' batch/seq axis (even extent) for v7x's two TCs.
            grid=(1,),
            in_specs=[
                pl.BlockSpec((B * S, D), lambda i: (0, 0)),
                pl.BlockSpec((1, H, S, S), lambda i: (0, 0, 0, 0)),
                pl.BlockSpec((D, 3 * INNER), lambda i: (0, 0)),
                pl.BlockSpec((INNER, D), lambda i: (0, 0)),
                pl.BlockSpec((1, D), lambda i: (0, 0)),
            ],
            out_specs=pl.BlockSpec((B * S, D), lambda i: (0, 0)),
        ),
        compiler_params=pltpu.CompilerParams(
            dimension_semantics=("arbitrary",)),
        cost_estimate=pl.CostEstimate(
            flops=int(flops),
            transcendentals=int(transcendentals),
            bytes_accessed=int(bytes_accessed)),
    )(hidden_2d, position_bias, wqkv, wo, lnw)

    return out_2d.reshape(B, S, D)


def reference_jax(hidden, position_bias, params):
    """Pure-JAX f32 reference mirroring T5LayerSelfAttention.forward (eval)."""
    B, S, D = hidden.shape
    var = jnp.mean(hidden * hidden, axis=-1, keepdims=True)
    norm_x = hidden * jax.lax.rsqrt(var + LN_EPS) * params["lnw"][0]
    q = norm_x @ params["wq"]
    k = norm_x @ params["wk"]
    v = norm_x @ params["wv"]

    def split(x):
        return x.reshape(B, S, N_HEADS, D_KV).transpose(0, 2, 1, 3)

    qh, kh, vh = split(q), split(k), split(v)
    scores = jnp.einsum("bhqd,bhkd->bhqk", qh, kh) + position_bias
    w = jax.nn.softmax(scores.astype(jnp.float32), axis=-1).astype(scores.dtype)
    ctx = jnp.einsum("bhqk,bhkd->bhqd", w, vh)
    ctx = ctx.transpose(0, 2, 1, 3).reshape(B, S, INNER)
    return hidden + ctx @ params["wo"]


if __name__ == "__main__":
    key = jax.random.PRNGKey(0)
    kh_, kb, k1, k2, k3, k4 = jax.random.split(key, 6)

    B, S = 2, 8
    hidden = jax.random.normal(kh_, (B, S, D_MODEL), dtype=jnp.float32)
    position_bias = 0.1 * jax.random.normal(
        kb, (1, N_HEADS, S, S), dtype=jnp.float32)

    params = {
        "wq": 0.05 * jax.random.normal(k1, (D_MODEL, INNER), dtype=jnp.float32),
        "wk": 0.05 * jax.random.normal(k2, (D_MODEL, INNER), dtype=jnp.float32),
        "wv": 0.05 * jax.random.normal(k3, (D_MODEL, INNER), dtype=jnp.float32),
        "wo": 0.05 * jax.random.normal(k4, (INNER, D_MODEL), dtype=jnp.float32),
        "lnw": jnp.ones((1, D_MODEL), dtype=jnp.float32),
    }

    out = t5_layer_self_attention(hidden, position_bias, params)
    out = jax.block_until_ready(out)

    ref = reference_jax(hidden, position_bias, params)
    # Tolerance sized for bf16 MXU operands (f32 accumulation) and the
    # approximate (EUP) softmax reciprocal vs. the all-f32 reference.
    assert jnp.allclose(out, ref, atol=1e-2, rtol=1e-2), "mismatch vs reference"

    print("KERNEL_OK")
</pallas_src>

<mosaic_0001>
module attributes {stable_mosaic.version = 11 : i64} {
  func.func @t5_self_attn_kernel(%arg0: i32, %arg1: memref<16x32xf32, #tpu.memory_space<vmem>>, %arg2: memref<1x4x8x8xf32, #tpu.memory_space<vmem>>, %arg3: memref<32x96xbf16, #tpu.memory_space<vmem>>, %arg4: memref<32x32xbf16, #tpu.memory_space<vmem>>, %arg5: memref<1x32xf32, #tpu.memory_space<vmem>>, %arg6: memref<16x32xf32, #tpu.memory_space<vmem>>) attributes {dimension_semantics = [#tpu.dimension_semantics<arbitrary>], iteration_bounds = array<i64: 1>, scalar_prefetch = 0 : i64, scratch_operands = 0 : i64, tpu.core_type = #tpu.core_type<tc>, window_params = [{pipeline_mode = #tpu.pipeline_mode<synchronous>, transform_indices = @transform_0, window_bounds = array<i64: 16, 32>}, {pipeline_mode = #tpu.pipeline_mode<synchronous>, transform_indices = @transform_1, window_bounds = array<i64: 1, 4, 8, 8>}, {pipeline_mode = #tpu.pipeline_mode<synchronous>, transform_indices = @transform_2, window_bounds = array<i64: 32, 96>}, {pipeline_mode = #tpu.pipeline_mode<synchronous>, transform_indices = @transform_3, window_bounds = array<i64: 32, 32>}, {pipeline_mode = #tpu.pipeline_mode<synchronous>, transform_indices = @transform_4, window_bounds = array<i64: 1, 32>}, {pipeline_mode = #tpu.pipeline_mode<synchronous>, transform_indices = @transform_5, window_bounds = array<i64: 16, 32>}]} {
    %c0 = arith.constant 0 : index
    %c0_0 = arith.constant 0 : index
    %0 = vector.load %arg1[%c0, %c0_0] : memref<16x32xf32, #tpu.memory_space<vmem>>, vector<16x32xf32>
    %1 = arith.mulf %0, %0 : vector<16x32xf32>
    %cst = arith.constant dense<0.000000e+00> : vector<16xf32>
    %2 = vector.multi_reduction <add>, %1, %cst [1] : vector<16x32xf32> to vector<16xf32>
    %3 = vector.shape_cast %2 : vector<16xf32> to vector<16x1xf32>
    %cst_1 = arith.constant 3.200000e+01 : f32
    %4 = vector.broadcast %cst_1 : f32 to vector<16x1xf32>
    %5 = arith.divf %3, %4 : vector<16x1xf32>
    %cst_2 = arith.constant 9.99999997E-7 : f32
    %6 = vector.broadcast %cst_2 : f32 to vector<16x1xf32>
    %7 = arith.addf %5, %6 : vector<16x1xf32>
    %8 = math.rsqrt %7 : vector<16x1xf32>
    %9 = vector.broadcast %8 : vector<16x1xf32> to vector<16x32xf32>
    %10 = arith.mulf %0, %9 : vector<16x32xf32>
    %c0_3 = arith.constant 0 : index
    %c0_4 = arith.constant 0 : index
    %11 = vector.load %arg5[%c0_3, %c0_4] : memref<1x32xf32, #tpu.memory_space<vmem>>, vector<1x32xf32>
    %12 = vector.broadcast %11 : vector<1x32xf32> to vector<16x32xf32>
    %13 = arith.mulf %10, %12 : vector<16x32xf32>
    %14 = arith.truncf %13 : vector<16x32xf32> to vector<16x32xbf16>
    %c0_5 = arith.constant 0 : index
    %c0_6 = arith.constant 0 : index
    %15 = vector.load %arg3[%c0_5, %c0_6] : memref<32x96xbf16, #tpu.memory_space<vmem>>, vector<32x96xbf16>
    %cst_7 = arith.constant dense<0.000000e+00> : vector<16x96xf32>
    %16 = tpu.matmul %14, %15, %cst_7 {dimension_numbers = #tpu.dot_dimension_numbers<[1], [0], [0], [1], [0, 0, 1, 1], [], []>} : vector<16x32xbf16>, vector<32x96xbf16>, vector<16x96xf32> -> vector<16x96xf32>
    %17 = vector.extract_strided_slice %16 {offsets = [0, 0], sizes = [16, 32], strides = [1, 1]} : vector<16x96xf32> to vector<16x32xf32>
    %18 = vector.shape_cast %17 : vector<16x32xf32> to vector<2x8x4x8xf32>
    %19 = tpu.transpose %18, [0, 2, 1, 3] : vector<2x8x4x8xf32> -> vector<2x4x8x8xf32>
    %20 = vector.shape_cast %19 : vector<2x4x8x8xf32> to vector<8x8x8xf32>
    %21 = arith.truncf %20 : vector<8x8x8xf32> to vector<8x8x8xbf16>
    %22 = vector.extract_strided_slice %16 {offsets = [0, 32], sizes = [16, 32], strides = [1, 1]} : vector<16x96xf32> to vector<16x32xf32>
    %23 = vector.shape_cast %22 : vector<16x32xf32> to vector<2x8x4x8xf32>
    %24 = tpu.transpose %23, [0, 2, 1, 3] : vector<2x8x4x8xf32> -> vector<2x4x8x8xf32>
    %25 = vector.shape_cast %24 : vector<2x4x8x8xf32> to vector<8x8x8xf32>
    %26 = arith.truncf %25 : vector<8x8x8xf32> to vector<8x8x8xbf16>
    %27 = vector.extract_strided_slice %16 {offsets = [0, 64], sizes = [16, 32], strides = [1, 1]} : vector<16x96xf32> to vector<16x32xf32>
    %28 = vector.shape_cast %27 : vector<16x32xf32> to vector<2x8x4x8xf32>
    %29 = tpu.transpose %28, [0, 2, 1, 3] : vector<2x8x4x8xf32> -> vector<2x4x8x8xf32>
    %30 = vector.shape_cast %29 : vector<2x4x8x8xf32> to vector<8x8x8xf32>
    %31 = arith.truncf %30 : vector<8x8x8xf32> to vector<8x8x8xbf16>
    "tpu.trace_start"() <{level = 10 : i32, message = "gqk,gsk->gqs"}> : () -> ()
    %cst_8 = arith.constant dense<0.000000e+00> : vector<8x8x8xf32>
    %32 = tpu.matmul %21, %26, %cst_8 {dimension_numbers = #tpu.dot_dimension_numbers<[2], [2], [1], [1], [0, 0, 0, 1, 1, 1], [0], [0]>} : vector<8x8x8xbf16>, vector<8x8x8xbf16>, vector<8x8x8xf32> -> vector<8x8x8xf32>
    "tpu.trace_stop"() : () -> ()
    %c0_9 = arith.constant 0 : index
    %c0_10 = arith.constant 0 : index
    %c0_11 = arith.constant 0 : index
    %c0_12 = arith.constant 0 : index
    %33 = vector.load %arg2[%c0_9, %c0_10, %c0_11, %c0_12] : memref<1x4x8x8xf32, #tpu.memory_space<vmem>>, vector<1x4x8x8xf32>
    %34 = vector.shape_cast %33 : vector<1x4x8x8xf32> to vector<1x4x8x8xf32>
    %35 = vector.broadcast %34 : vector<1x4x8x8xf32> to vector<2x4x8x8xf32>
    %36 = vector.shape_cast %35 : vector<2x4x8x8xf32> to vector<8x8x8xf32>
    %37 = arith.addf %32, %36 : vector<8x8x8xf32>
    %cst_13 = arith.constant dense<0xFF800000> : vector<8x8xf32>
    %38 = vector.multi_reduction <maximumf>, %37, %cst_13 [2] : vector<8x8x8xf32> to vector<8x8xf32>
    %39 = vector.shape_cast %38 : vector<8x8xf32> to vector<8x8x1xf32>
    %cst_14 = arith.constant -1.000000e+30 : f32
    %40 = vector.broadcast %cst_14 : f32 to vector<8x8x1xf32>
    %41 = arith.maximumf %39, %40 : vector<8x8x1xf32>
    %42 = vector.broadcast %41 : vector<8x8x1xf32> to vector<8x8x8xf32>
    %43 = arith.subf %37, %42 : vector<8x8x8xf32>
    %44 = math.exp %43 : vector<8x8x8xf32>
    %cst_15 = arith.constant dense<0.000000e+00> : vector<8x8xf32>
    %45 = vector.multi_reduction <add>, %44, %cst_15 [2] : vector<8x8x8xf32> to vector<8x8xf32>
    %46 = vector.shape_cast %45 : vector<8x8xf32> to vector<8x8x1xf32>
    %cst_16 = arith.constant 1.000000e-30 : f32
    %47 = vector.broadcast %cst_16 : f32 to vector<8x8x1xf32>
    %48 = arith.maximumf %46, %47 : vector<8x8x1xf32>
    %49 = arith.truncf %44 : vector<8x8x8xf32> to vector<8x8x8xbf16>
    "tpu.trace_start"() <{level = 10 : i32, message = "gqs,gsk->gqk"}> : () -> ()
    %cst_17 = arith.constant dense<0.000000e+00> : vector<8x8x8xf32>
    %50 = tpu.matmul %49, %31, %cst_17 {dimension_numbers = #tpu.dot_dimension_numbers<[2], [1], [1], [2], [0, 0, 0, 1, 1, 2], [0], [0]>} : vector<8x8x8xbf16>, vector<8x8x8xbf16>, vector<8x8x8xf32> -> vector<8x8x8xf32>
    "tpu.trace_stop"() : () -> ()
    %51 = tpu.reciprocal %48 {approx = true} : vector<8x8x1xf32> -> vector<8x8x1xf32>
    %52 = vector.broadcast %51 : vector<8x8x1xf32> to vector<8x8x8xf32>
    %53 = arith.mulf %50, %52 : vector<8x8x8xf32>
    %54 = vector.shape_cast %53 : vector<8x8x8xf32> to vector<2x4x8x8xf32>
    %55 = tpu.transpose %54, [0, 2, 1, 3] : vector<2x4x8x8xf32> -> vector<2x8x4x8xf32>
    %56 = vector.shape_cast %55 : vector<2x8x4x8xf32> to vector<16x32xf32>
    %57 = arith.truncf %56 : vector<16x32xf32> to vector<16x32xbf16>
    %c0_18 = arith.constant 0 : index
    %c0_19 = arith.constant 0 : index
    %58 = vector.load %arg4[%c0_18, %c0_19] : memref<32x32xbf16, #tpu.memory_space<vmem>>, vector<32x32xbf16>
    %cst_20 = arith.constant dense<0.000000e+00> : vector<16x32xf32>
    %59 = tpu.matmul %57, %58, %cst_20 {dimension_numbers = #tpu.dot_dimension_numbers<[1], [0], [0], [1], [0, 0, 1, 1], [], []>} : vector<16x32xbf16>, vector<32x32xbf16>, vector<16x32xf32> -> vector<16x32xf32>
    %60 = arith.addf %0, %59 : vector<16x32xf32>
    %c0_21 = arith.constant 0 : index
    %c0_22 = arith.constant 0 : index
    %61 = vector.load %arg6[%c0_21, %c0_22] : memref<16x32xf32, #tpu.memory_space<vmem>>, vector<16x32xf32>
    tpu.vector_store %arg6[%c0_21, %c0_22], %60 {strides = array<i32>} : memref<16x32xf32, #tpu.memory_space<vmem>>, vector<16x32xf32>,
    return
  }
  func.func @transform_0(%arg0: i32) -> (i32, i32) {
    %c0_i32 = arith.constant 0 : i32
    %c0_i32_0 = arith.constant 0 : i32
    %c0_i32_1 = arith.constant 0 : i32
    return %c0_i32, %c0_i32_0 : i32, i32
  }
  func.func @transform_1(%arg0: i32) -> (i32, i32, i32, i32) {
    %c0_i32 = arith.constant 0 : i32
    %c0_i32_0 = arith.constant 0 : i32
    %c0_i32_1 = arith.constant 0 : i32
    %c0_i32_2 = arith.constant 0 : i32
    %c0_i32_3 = arith.constant 0 : i32
    return %c0_i32, %c0_i32_0, %c0_i32_1, %c0_i32_2 : i32, i32, i32, i32
  }
  func.func @transform_2(%arg0: i32) -> (i32, i32) {
    %c0_i32 = arith.constant 0 : i32
    %c0_i32_0 = arith.constant 0 : i32
    %c0_i32_1 = arith.constant 0 : i32
    return %c0_i32, %c0_i32_0 : i32, i32
  }
  func.func @transform_3(%arg0: i32) -> (i32, i32) {
    %c0_i32 = arith.constant 0 : i32
    %c0_i32_0 = arith.constant 0 : i32
    %c0_i32_1 = arith.constant 0 : i32
    return %c0_i32, %c0_i32_0 : i32, i32
  }
  func.func @transform_4(%arg0: i32) -> (i32, i32) {
    %c0_i32 = arith.constant 0 : i32
    %c0_i32_0 = arith.constant 0 : i32
    %c0_i32_1 = arith.constant 0 : i32
    return %c0_i32, %c0_i32_0 : i32, i32
  }
  func.func @transform_5(%arg0: i32) -> (i32, i32) {
    %c0_i32 = arith.constant 0 : i32
    %c0_i32_0 = arith.constant 0 : i32
    %c0_i32_1 = arith.constant 0 : i32
    return %c0_i32, %c0_i32_0 : i32, i32
  }
}

</mosaic_0001>

<bundles_post_ra>
// kernel: tpu_custom_call.1
= control target key start
LH: loop header
LB: loop body
LE: loop exit
PB: predicated region body
PF: predicated region fallthrough
CT: control target
= control target key end

     0   :  { %10 = vsyncpa [#allocation3], 0  ;;  %s2597_s0 = inlined_call_operand.hbm [shape: f32[16,32], index: 0, kind: input, shape index: {}]   ;;  %s2598_s1 = inlined_call_operand.hbm [shape: f32[1,4,8,8], index: 1, kind: input, shape index: {}]   ;;  %s2599_s2 = inlined_call_operand.hbm [shape: bf16[32,96], index: 2, kind: input, shape index: {}]   ;;  %s2600_s3 = inlined_call_operand.hbm [shape: bf16[32,32], index: 3, kind: input, shape index: {}]   ;;  %s2601_s4 = inlined_call_operand.vmem [shape: f32[1,32], index: 4, kind: input, shape index: {}]   ;;  %s2602_s5 = inlined_call_operand.hbm [shape: f32[16,32], index: 5, kind: output, shape index: {}]  }
   0x1   :  { %11 = vsyncpa [#allocation6], 0 }
   0x2   :  { %12 = vsyncpa [#allocation9], 0 }
   0x3   :  { %13 = vsyncpa [#allocation4], 0  ;;  %s31_s20 = sshll.u32 %s2598_s1, 4  ;;  %s1935_s21 = smov [#allocation5]   ;;  %s32_s20 = int_to_ptr.hbm [resolvable:$true] %s31_s20 }
   0x4   :  { %s33_s22 = sshll.u32 %s1935_s21, 4  ;;  %s18_s25 = sshll.u32 %s2597_s0, 4  ;;  %s34_s22 = int_to_ptr.vmem [resolvable:$true] %s33_s22  ;;  %s19_s25 = int_to_ptr.hbm [resolvable:$true] %s18_s25 }
   0x5   :  { %s1936_s26 = smov 128   ;;  %s1937_s27 = smov 8  }
   0x6   :  { %39 = dma.hbm_to_vmem [thread:$0]  %s32_s20, 512, %s34_s22, [#allocation6], %s1936_s26, %s1936_s26, %s1937_s27  }
   0x7   :  { %s1938_s28 = smov [#allocation2]   ;;  %s44_s1 = sshll.u32 %s2599_s2, 4  ;;  %s45_s1 = int_to_ptr.hbm [resolvable:$true] %s44_s1 }
   0x8   :  { %s20_s29 = sshll.u32 %s1938_s28, 4  ;;  %s1939_s0 = smov [#allocation7]   ;;  %s21_s29 = int_to_ptr.vmem [resolvable:$true] %s20_s29 }
   0x9   :  { %26 = dma.hbm_to_vmem [thread:$0]  %s19_s25, 256, %s21_s29, [#allocation3], %s1936_s26, %s1936_s26, %s1937_s27  }
   0xa   :  { %s46_s7 = sshll.u32 %s1939_s0, 4  ;;  %s57_s10 = sshll.u32 %s2600_s3, 4  ;;  %s47_s7 = int_to_ptr.vmem [resolvable:$true] %s46_s7  ;;  %s58_s10 = int_to_ptr.hbm [resolvable:$true] %s57_s10 }
   0xb   :  { %s1940_s11 = smov 64   ;;  %s1941_s12 = smov 4  }
   0xc   :  { %52 = dma.hbm_to_vmem [thread:$0]  %s45_s1, 256, %s47_s7, [#allocation6], %s1940_s11, %s1940_s11, %s1941_s12  }
   0xd   :  { %s1942_s2 = smov [#allocation8]  }
   0xe   :  { %s59_s13 = sshll.u32 %s1942_s2, 4  ;;  %s60_s13 = int_to_ptr.vmem [resolvable:$true] %s59_s13 }
   0xf   :  { %65 = dma.hbm_to_vmem [thread:$0]  %s58_s10, 256, %s60_s13, [#allocation9], %s1940_s11, %s1940_s11, %s1941_s12  }
  0x10   :  { %1927 = dma.done.wait [#allocation3], 256  }
  0x11   :  { %1928 = vsyncadd [#allocation3], 4294967040 }
  0x12   :  { %1929 = dma.done.wait [#allocation6], 768  }
  0x13   :  { %1930 = vsyncadd [#allocation6], 4294966528 }
  0x14   :  { %1931 = dma.done.wait [#allocation9], 256  }
  0x15   :  { %1932 = vsyncadd [#allocation9], 4294967040  ;;  %v85_v0 = vld [vmem:[#allocation2] sm:$0xff]  ;;  %vm89_vm0 = vcmask 261120   ;;  %v86_v2 = vld [vmem:[#allocation2 + $0x8] sm:$0xff]  ;;  %v1943_v6 = vmov 32.0  }
  0x16   :  { %v87_v1 = vmul.f32 %v85_v0, %v85_v0  ;;  %v88_v4 = vmul.f32 %v86_v2, %v86_v2  ;;  %1767 = vrcp.f32 %v1943_v6  ;;  %v1690_v12 = vld [vmem:[#allocation7 + $0x8] sm:$0xff]  ;;  %v1689_v14 = vld [vmem:[#allocation7] sm:$0xff]  ;;  %v1766_v35 = vld [vmem:[%s2601_s4] ss:$0 sm:$0xff]  ;;  %s1944_s15 = smov 104   ;;  %s1945_s16 = smov 120  }
  0x17   :  { %161 = vmatpush.bf16.msra.mxu0 %v1690_v12  ;;  %s1946_s17 = smov 112   ;;  %vm190_vm8 = vcmask 1047556   ;;  %v1947_v45 = vmov 1983009808   ;;  %s1948_s4 = smov 96   ;;  %vm926_vm9 = vcmask 64512  }
  0x18   :  { %v90_v3 = vsel %vm89_vm0, %v87_v1, 0.0  ;;  %v93_v5 = vsel %vm89_vm0, %v88_v4, 0.0  ;;  %v195_v46 = vunpack.c.l.s4 %v1947_v45  ;;  %v1949_v53 = vmov 1934713408   ;;  %s1950_s18 = smov 24   ;;  %s1951_s19 = smov 16  }
  0x19   :  { %91 = vadd.xlane.f32.xlu0 %v90_v3  ;;  %v219_v54 = vunpack.c.l.s4 %v1949_v53  ;;  %vm1178_vm10 = vcmask 1043456   ;;  %vm1590_vm11 = vcmask 130048   ;;  %vm1593_vm12 = vcmask 195584   ;;  %s1952_s20 = smov [#allocation10]   ;;  %s1640_s24 = sshll.u32 %s2602_s5, 4  ;;  %s1641_s24 = int_to_ptr.hbm [resolvable:$true] %s1640_s24 }
  0x1a   :  { %v2019_v52 = vunpack.c.0.s8 %v195_v46  ;;  %s1638_s21 = sshll.u32 %s1952_s20, 4  ;;  %s1639_s21 = int_to_ptr.vmem [resolvable:$true] %s1638_s21 }
  0x1b   :  { %162 = vmatpush.bf16.msra.mxu0 %v1689_v14  ;;  %v2025_v60 = vunpack.c.0.s8 %v219_v54 }
  0x1c   :  { %v1768_v7 = vpop.eup %1767 }
  0x1d   :  { %v97_v8 = vmul.f32 32.0, %v1768_v7  ;;  %vm101_vm1 = vweird.f32 %v1768_v7 }
  0x1f   :  { %v98_v9 = vsub.f32 1.0, %v97_v8 }
  0x21   :  { %94 = vadd.xlane.f32.xlu0 %v93_v5  ;;  %v99_v10 = vmul.f32 %v1768_v7, %v98_v9 }
  0x23   :  { %v100_v11 = vadd.f32 %v1768_v7, %v99_v10 }
  0x25   :  { %v102_v13 = vsel %vm101_vm1, %v1768_v7, %v100_v11 }
  0x8c   :  { %v92_v15 = vpop.xlane.xlu0 %91 }
  0x8d   :  { %v103_v16 = vmul.f32 %v102_v13, %v92_v15 }
  0x8f   :  { %v105_v17 = vadd.f32 1e-06, %v103_v16 }
  0x91   :  { %1769 = vrsqrt.f32 %v105_v17  ;;  %vm113_vm3 = vweird.f32 %v105_v17 }
  0x94   :  { %v95_v18 = vpop.xlane.xlu0 %94 }
  0x95   :  { %v104_v19 = vmul.f32 %v102_v13, %v95_v18 }
  0x97   :  { %v1770_v20 = vpop.eup %1769  ;;  %v106_v21 = vadd.f32 1e-06, %v104_v19 }
  0x98   :  { %v108_v22 = vmul.f32 %v1770_v20, %v105_v17  ;;  %vm114_vm2 = vweird.f32 %v1770_v20 }
  0x99   :  { %1771 = vrsqrt.f32 %v106_v21  ;;  %vm115_vm4 = vmor %vm113_vm3, %vm114_vm2  ;;  %vm123_vm6 = vweird.f32 %v106_v21 }
  0x9a   :  { %v109_v23 = vmul.f32 %v1770_v20, %v108_v22 }
  0x9c   :  { %v110_v24 = vmul.f32 0.5, %v109_v23 }
  0x9e   :  { %v111_v25 = vsub.f32 1.5, %v110_v24 }
  0x9f   :  { %v1772_v26 = vpop.eup %1771 }
  0xa0   :  { %v118_v27 = vmul.f32 %v1772_v26, %v106_v21  ;;  %v112_v28 = vmul.f32 %v1770_v20, %v111_v25  ;;  %vm124_vm5 = vweird.f32 %v1772_v26 }
  0xa1   :  { %vm125_vm7 = vmor %vm123_vm6, %vm124_vm5 }
  0xa2   :  { %v119_v29 = vmul.f32 %v1772_v26, %v118_v27  ;;  %v116_v31 = vsel %vm115_vm4, %v1770_v20, %v112_v28 }
  0xa3   :  { %v127_v34 = vmul.f32 %v116_v31, %v85_v0 }
  0xa4   :  { %v120_v30 = vmul.f32 0.5, %v119_v29 }
  0xa5   :  { %v133_v38 = vmul.f32 %v1766_v35, %v127_v34 }
  0xa6   :  { %v121_v32 = vsub.f32 1.5, %v120_v30 }
  0xa8   :  { %v122_v33 = vmul.f32 %v1772_v26, %v121_v32 }
  0xaa   :  { %v126_v36 = vsel %vm125_vm7, %v1772_v26, %v122_v33 }
  0xab   :  { %v128_v37 = vmul.f32 %v126_v36, %v86_v2 }
  0xad   :  { %v134_v39 = vmul.f32 %v1766_v35, %v128_v37 }
  0xaf   :  { %v135_v40 = vpack.c.bf16 %v134_v39, %v133_v38 }
  0xb1   :  { %1663 = vmatmul.msk.bf16.vlgmr.msra.gmra.mxu0 %vm89_vm0, %v135_v40 }
 0x12e   :  { %v164_v41 = vpop.f32.mrf.mxu0 }
 0x12f   :  { %183 = vrot.lane.b32.xlu2 %v164_v41, %s1944_s15  ;;  %171 = vrot.lane.b32.xlu1 %v164_v41, %s1945_s16  ;;  %v192_v57 = vrot.slane %v164_v41, 4 }
 0x136   :  { %v2011_v42 = vpop.f32.mrf.mxu0 }
 0x137   :  { %177 = vrot.lane.b32.xlu1 %v164_v41, %s1946_s17  ;;  %179 = vrot.lane.b32.xlu0 %v2011_v42, %s1946_s17 }
 0x138   :  { %173 = vrot.lane.b32.xlu2 %v2011_v42, %s1945_s16 }
 0x13f   :  { %185 = vrot.lane.b32.xlu1 %v2011_v42, %s1944_s15 }
 0x189   :  { %v184_v43 = vpop.permute.xlu2 %183 }
 0x18a   :  { %v202_v44 = vrot.slane %v184_v43, 4 }
 0x192   :  { %v2021_v55 = vpop.permute.xlu2 %173 }
 0x193   :  { %v1721_v63 = vpack.i.bf16 %v2021_v55, %v2011_v42 }
 0x1a1   :  { %v172_v47 = vpop.permute.xlu1 %171 }
 0x1a2   :  { %v203_v48 = vsel %vm190_vm8, %v202_v44, %v172_v47  ;;  %v204_v49 = vrot.slane %v172_v47, 4  ;;  %v1711_v50 = vpack.i.bf16 %v172_v47, %v164_v41 }
 0x1a3   :  { %v209_v58 = vperm.slane %v203_v48, %v2019_v52 }
 0x1a4   :  { %v205_v51 = vsel %vm190_vm8, %v184_v43, %v204_v49  ;;  %1712 = vrot.lane.b32.xlu2 %v1711_v50, %s1948_s4 }
 0x1a5   :  { %v213_v56 = vperm.slane %v205_v51, %v2019_v52  ;;  %v214_v4 = vrot.slane %v209_v58, 4 }
 0x1a7   :  { %v226_v0 = vrot.slane %v213_v56, 4 }
 0x1a9   :  { %v178_v59 = vpop.permute.xlu1 %177  ;;  %v180_v19 = vpop.permute.xlu0 %179 }
 0x1aa   :  { %v189_v61 = vrot.slane %v178_v59, 4  ;;  %v193_v62 = vsel %vm190_vm8, %v178_v59, %v192_v57  ;;  %v1716_v2 = vpack.i.bf16 %v184_v43, %v178_v59 }
 0x1ab   :  { %v201_v1 = vperm.slane %v193_v62, %v2019_v52  ;;  %v248_v62 = vrot.slane %v2011_v42, 4 }
 0x1ac   :  { %v191_v3 = vsel %vm190_vm8, %v189_v61, %v164_v41  ;;  %1722 = vrot.lane.b32.xlu2 %v1721_v63, %s1948_s4  ;;  %1717 = vrot.lane.b32.xlu1 %v1716_v2, %s1948_s4  ;;  %v246_v61 = vrot.slane %v180_v19, 4 }
 0x1ad   :  { %v197_v5 = vperm.slane %v191_v3, %v2019_v52  ;;  %v227_v6 = vsel %vm190_vm8, %v226_v0, %v201_v1  ;;  %v228_v7 = vrot.slane %v201_v1, 4  ;;  %1737 = vrot.lane.b32.xlu0 %v1716_v2, %s1940_s11  ;;  %v260_v0 = vrot.slane %v2021_v55, 4 }
 0x1ae   :  { %v233_v8 = vperm.slane %v227_v6, %v2025_v60  ;;  %v247_v1 = vsel %vm190_vm8, %v246_v61, %v2011_v42  ;;  %v249_v2 = vsel %vm190_vm8, %v180_v19, %v248_v62 }
 0x1af   :  { %v215_v9 = vsel %vm190_vm8, %v214_v4, %v197_v5  ;;  %v216_v10 = vrot.slane %v197_v5, 4  ;;  %v229_v11 = vsel %vm190_vm8, %v213_v56, %v228_v7  ;;  %v253_v5 = vperm.slane %v247_v1, %v2019_v52 }
 0x1b0   :  { %v221_v12 = vperm.slane %v215_v9, %v2025_v60  ;;  %v237_v13 = vperm.slane %v229_v11, %v2025_v60  ;;  %v242_v17 = vrot.slane %v233_v8, 4  ;;  %v257_v6 = vperm.slane %v249_v2, %v2019_v52 }
 0x1b1   :  { %v217_v14 = vsel %vm190_vm8, %v209_v58, %v216_v10  ;;  %v186_v15 = vpop.permute.xlu1 %185  ;;  %v272_v9 = vrot.slane %v253_v5, 4 }
 0x1b2   :  { %v225_v16 = vperm.slane %v217_v14, %v2025_v60  ;;  %v244_v18 = vrot.slane %v237_v13, 4  ;;  %v1746_v20 = vpack.i.bf16 %v186_v15, %v180_v19  ;;  %v238_v21 = vrot.slane %v221_v12, 4 }
 0x1b3   :  { %v243_v26 = vsel %vm190_vm8, 0.0, %v242_v17  ;;  %v261_v4 = vsel %vm190_vm8, %v186_v15, %v260_v0  ;;  %v284_v10 = vrot.slane %v257_v6, 4 }
 0x1b4   :  { %v240_v22 = vrot.slane %v225_v16, 4  ;;  %v245_v23 = vsel %vm190_vm8, 0.0, %v244_v18  ;;  %v313_v24 = vsel %vm190_vm8, %v244_v18, %v233_v8  ;;  %1732 = vrot.lane.b32.xlu2 %v1711_v50, %s1940_s11  ;;  %1727 = vrot.lane.b32.xlu1 %v1746_v20, %s1948_s4  ;;  %v239_v32 = vsel %vm190_vm8, 0.0, %v238_v21 }
 0x1b5   :  { %v318_v25 = vrot.slane %v245_v23, 4  ;;  %1747 = vrot.lane.b32.xlu0 %v1746_v20, %s1940_s11  ;;  %v317_v31 = vperm.slane %v313_v24, %v2019_v52  ;;  %v269_v8 = vperm.slane %v261_v4, %v2019_v52 }
 0x1b6   :  { %v241_v27 = vsel %vm190_vm8, 0.0, %v240_v22  ;;  %v302_v28 = vsel %vm190_vm8, %v240_v22, %v221_v12 }
 0x1b7   :  { %v307_v29 = vrot.slane %v241_v27, 4  ;;  %v319_v30 = vsel %vm190_vm8, %v318_v25, %v243_v26  ;;  %v306_v33 = vperm.slane %v302_v28, %v2019_v52  ;;  %v338_v39 = vrot.slane %v317_v31, 4 }
 0x1b8   :  { %v323_v36 = vperm.slane %v319_v30, %v2019_v52  ;;  %v282_v12 = vrot.slane %v269_v8, 4  ;;  %v285_v13 = vsel %vm190_vm8, %v269_v8, %v284_v10 }
 0x1b9   :  { %v308_v34 = vsel %vm190_vm8, %v307_v29, %v239_v32  ;;  %v326_v37 = vrot.slane %v306_v33, 4  ;;  %v293_v14 = vperm.slane %v285_v13, %v2025_v60 }
 0x1ba   :  { %v312_v35 = vperm.slane %v308_v34, %v2019_v52  ;;  %v339_v41 = vsel %vm190_vm8, %v323_v36, %v338_v39  ;;  %v336_v45 = vrot.slane %v323_v36, 4  ;;  %v283_v16 = vsel %vm190_vm8, %v282_v12, %v257_v6 }
 0x1bb   :  { %v347_v43 = vperm.slane %v339_v41, %v2025_v60  ;;  %v289_v19 = vperm.slane %v283_v16, %v2025_v60  ;;  %v300_v21 = vrot.slane %v293_v14, 4 }
 0x1bc   :  { %1742 = vrot.lane.b32.xlu2 %v1721_v63, %s1940_s11  ;;  %v327_v38 = vsel %vm190_vm8, %v312_v35, %v326_v37  ;;  %v324_v44 = vrot.slane %v312_v35, 4  ;;  %v337_v49 = vsel %vm190_vm8, %v336_v45, %v317_v31  ;;  %v258_v63 = vrot.slane %v186_v15, 4 }
 0x1bd   :  { %v335_v40 = vperm.slane %v327_v38, %v2025_v60  ;;  %v352_v47 = vrot.slane %v347_v43, 4  ;;  %v343_v51 = vperm.slane %v337_v49, %v2025_v60  ;;  %v298_v24 = vrot.slane %v289_v19, 4 }
 0x1be   :  { %v325_v48 = vsel %vm190_vm8, %v324_v44, %v306_v33  ;;  %v259_v3 = vsel %vm190_vm8, %v258_v63, %v2021_v55  ;;  %v301_v25 = vsel %vm190_vm8, 0.0, %v300_v21  ;;  %v367_v31 = vsel %vm190_vm8, %v300_v21, %v289_v19 }
 0x1bf   :  { %v354_v46 = vrot.slane %v335_v40, 4  ;;  %v331_v50 = vperm.slane %v325_v48, %v2025_v60  ;;  %v2072_v54 = vsel %vm190_vm8, %v352_v47, %v335_v40  ;;  %v348_v56 = vrot.slane %v343_v51, 4 }
 0x1c0   :  { %v265_v7 = vperm.slane %v259_v3, %v2019_v52  ;;  %v372_v28 = vrot.slane %v301_v25, 4  ;;  %v299_v29 = vsel %vm190_vm8, 0.0, %v298_v24  ;;  %v371_v35 = vperm.slane %v367_v31, %v2019_v52 }
 0x1c1   :  { %v2069_v53 = vsel %vm190_vm8, %v347_v43, %v354_v46  ;;  %v350_v57 = vrot.slane %v331_v50, 4  ;;  %v2075_v58 = vsel %vm190_vm8, %v348_v56, %v331_v50  ;;  %v412_v1 = vpack.c.bf16 %v2072_v54, %v2072_v54 }
 0x1c2   :  { %v270_v11 = vrot.slane %v265_v7, 4  ;;  %v273_v42 = vsel %vm190_vm8, %v265_v7, %v272_v9  ;;  %v373_v32 = vsel %vm190_vm8, %v372_v28, %v299_v29  ;;  %v392_v41 = vrot.slane %v371_v35, 4 }
 0x1c3   :  { %v2078_v59 = vsel %vm190_vm8, %v343_v51, %v350_v57  ;;  %v281_v55 = vperm.slane %v273_v42, %v2025_v60  ;;  %v377_v38 = vperm.slane %v373_v32, %v2019_v52  ;;  %v410_v2 = vpack.c.bf16 %v2075_v58, %v2075_v58 }
 0x1c4   :  { %v271_v15 = vsel %vm190_vm8, %v270_v11, %v253_v5  ;;  %v413_v3 = vpack.c.bf16 %v2069_v53, %v2069_v53  ;;  %v411_v4 = vpack.c.bf16 %v2078_v59, %v2078_v59 }
 0x1c5   :  { %v277_v18 = vperm.slane %v271_v15, %v2025_v60  ;;  %v296_v20 = vrot.slane %v281_v55, 4  ;;  %v390_v44 = vrot.slane %v377_v38, 4  ;;  %v393_v46 = vsel %vm190_vm8, %v377_v38, %v392_v41 }
 0x1c6   :  { %v2128_v51 = vperm.slane %v393_v46, %v2025_v60 }
 0x1c7   :  { %v294_v22 = vrot.slane %v277_v18, 4  ;;  %v297_v23 = vsel %vm190_vm8, 0.0, %v296_v20  ;;  %v356_v33 = vsel %vm190_vm8, %v296_v20, %v277_v18  ;;  %v391_v48 = vsel %vm190_vm8, %v390_v44, %v371_v35 }
 0x1c8   :  { %v361_v27 = vrot.slane %v297_v23, 4  ;;  %v360_v36 = vperm.slane %v356_v33, %v2019_v52  ;;  %v2134_v57 = vperm.slane %v391_v48, %v2025_v60  ;;  %v406_v9 = vrot.slane %v2128_v51, 4 }
 0x1c9   :  { %v295_v30 = vsel %vm190_vm8, 0.0, %v294_v22 }
 0x1ca   :  { %v362_v34 = vsel %vm190_vm8, %v361_v27, %v295_v30  ;;  %v380_v40 = vrot.slane %v360_v36, 4  ;;  %v402_v11 = vrot.slane %v2134_v57, 4 }
 0x1cb   :  { %v366_v37 = vperm.slane %v362_v34, %v2019_v52 }
 0x1cd   :  { %v378_v43 = vrot.slane %v366_v37, 4  ;;  %v381_v45 = vsel %vm190_vm8, %v366_v37, %v380_v40 }
 0x1ce   :  { %v2125_v50 = vperm.slane %v381_v45, %v2025_v60 }
 0x1cf   :  { %v379_v47 = vsel %vm190_vm8, %v378_v43, %v360_v36 }
 0x1d0   :  { %v2131_v56 = vperm.slane %v379_v47, %v2025_v60  ;;  %v408_v10 = vrot.slane %v2125_v50, 4 }
 0x1d2   :  { %v404_v42 = vrot.slane %v2131_v56, 4 }
 0x1fe   :  { %v2098_v17 = vpop.permute.xlu2 %1712 }
 0x1ff   :  { %v1715_v61 = vunpack.i.h.bf16 %v2098_v17  ;;  %v1714_v62 = vunpack.i.l.bf16 %v2098_v17 }
 0x201   :  { %v456_v12 = vrot.slane %v1715_v61, 4  ;;  %v444_v13 = vrot.slane %v1714_v62, 4 }
 0x206   :  { %v2104_v26 = vpop.permute.xlu2 %1722 }
 0x207   :  { %v1725_v63 = vunpack.i.h.bf16 %v2104_v26  ;;  %v1724_v0 = vunpack.i.l.bf16 %v2104_v26 }
 0x209   :  { %v2158_v55 = vrot.slane %v1725_v63, 4  ;;  %v2162_v14 = vrot.slane %v1724_v0, 4 }
 0x20e   :  { %v2116_v39 = vpop.permute.xlu2 %1732 }
 0x20f   :  { %v1735_v5 = vunpack.i.h.bf16 %v2116_v39  ;;  %v1734_v6 = vunpack.i.l.bf16 %v2116_v39 }
 0x211   :  { %v708_v21 = vrot.slane %v1735_v5, 4  ;;  %v696_v22 = vrot.slane %v1734_v6, 4 }
 0x216   :  { %v2122_v49 = vpop.permute.xlu2 %1742 }
 0x217   :  { %v1745_v7 = vunpack.i.h.bf16 %v2122_v49  ;;  %v1744_v8 = vunpack.i.l.bf16 %v2122_v49 }
 0x219   :  { %v2166_v23 = vrot.slane %v1745_v7, 4  ;;  %v2170_v24 = vrot.slane %v1744_v8, 4 }
 0x21e   :  { %v1718_v15 = vpop.permute.xlu1 %1717 }
 0x21f   :  { %v1738_v16 = vpop.permute.xlu0 %1737  ;;  %v1720_v17 = vunpack.i.h.bf16 %v1718_v15  ;;  %v1719_v18 = vunpack.i.l.bf16 %v1718_v15 }
 0x220   :  { %v1740_v19 = vunpack.i.h.bf16 %v1738_v16  ;;  %v1739_v20 = vunpack.i.l.bf16 %v1738_v16 }
 0x221   :  { %v454_v25 = vrot.slane %v1720_v17, 4  ;;  %v442_v27 = vrot.slane %v1719_v18, 4  ;;  %v445_v28 = vsel %vm190_vm8, %v1719_v18, %v444_v13  ;;  %v457_v29 = vsel %vm190_vm8, %v1720_v17, %v456_v12 }
 0x222   :  { %v453_v30 = vperm.slane %v445_v28, %v2019_v52  ;;  %v465_v31 = vperm.slane %v457_v29, %v2019_v52  ;;  %v706_v32 = vrot.slane %v1740_v19, 4  ;;  %v694_v33 = vrot.slane %v1739_v20, 4 }
 0x223   :  { %v443_v34 = vsel %vm190_vm8, %v442_v27, %v1714_v62  ;;  %v455_v35 = vsel %vm190_vm8, %v454_v25, %v1715_v61  ;;  %v697_v36 = vsel %vm190_vm8, %v1739_v20, %v696_v22  ;;  %v709_v37 = vsel %vm190_vm8, %v1740_v19, %v708_v21 }
 0x224   :  { %v449_v38 = vperm.slane %v443_v34, %v2019_v52  ;;  %v461_v39 = vperm.slane %v455_v35, %v2019_v52  ;;  %v478_v40 = vrot.slane %v465_v31, 4  ;;  %v480_v41 = vrot.slane %v453_v30, 4 }
 0x225   :  { %v695_v43 = vsel %vm190_vm8, %v694_v33, %v1734_v6  ;;  %v705_v44 = vperm.slane %v697_v36, %v2019_v52  ;;  %v707_v45 = vsel %vm190_vm8, %v706_v32, %v1735_v5  ;;  %v717_v46 = vperm.slane %v709_v37, %v2019_v52 }
 0x226   :  { %v466_v47 = vrot.slane %v461_v39, 4  ;;  %v468_v48 = vrot.slane %v449_v38, 4  ;;  %v479_v61 = vsel %vm190_vm8, %v478_v40, %v453_v30  ;;  %v481_v62 = vsel %vm190_vm8, %v465_v31, %v480_v41  ;;  %v1728_v35 = vpop.permute.xlu1 %1727 }
 0x227   :  { %v2189_v12 = vperm.slane %v479_v61, %v2025_v60  ;;  %v489_v13 = vperm.slane %v481_v62, %v2025_v60  ;;  %v701_v15 = vperm.slane %v695_v43, %v2019_v52  ;;  %v713_v6 = vperm.slane %v707_v45, %v2019_v52  ;;  %v1748_v34 = vpop.permute.xlu0 %1747 }
 0x228   :  { %v467_v16 = vsel %vm190_vm8, %v466_v47, %v449_v38  ;;  %v469_v5 = vsel %vm190_vm8, %v461_v39, %v468_v48  ;;  %v730_v17 = vrot.slane %v717_v46, 4  ;;  %v732_v18 = vrot.slane %v705_v44, 4 }
 0x229   :  { %v2197_v19 = vperm.slane %v467_v16, %v2025_v60  ;;  %v477_v20 = vperm.slane %v469_v5, %v2025_v60  ;;  %v494_v21 = vrot.slane %v2189_v12, 4  ;;  %v2201_v22 = vrot.slane %v489_v13, 4 }
 0x22a   :  { %v718_v25 = vrot.slane %v713_v6, 4  ;;  %v720_v27 = vrot.slane %v701_v15, 4  ;;  %v731_v28 = vsel %vm190_vm8, %v730_v17, %v705_v44  ;;  %v733_v29 = vsel %vm190_vm8, %v717_v46, %v732_v18 }
 0x22b   :  { %v490_v30 = vrot.slane %v2197_v19, 4  ;;  %v2206_v31 = vrot.slane %v477_v20, 4  ;;  %v2209_v32 = vsel %vm190_vm8, 0.0, %v494_v21  ;;  %v2213_v33 = vsel %vm190_vm8, 0.0, %v2201_v22 }
 0x22c   :  { %v570_v36 = vrot.slane %v2213_v33, 4  ;;  %v719_v37 = vsel %vm190_vm8, %v718_v25, %v701_v15  ;;  %v721_v38 = vsel %vm190_vm8, %v713_v6, %v720_v27  ;;  %v737_v39 = vperm.slane %v731_v28, %v2025_v60 }
 0x22d   :  { %v2221_v40 = vsel %vm190_vm8, 0.0, %v2206_v31  ;;  %v2224_v41 = vperm.slane %v719_v37, %v2025_v60  ;;  %v729_v43 = vperm.slane %v721_v38, %v2025_v60  ;;  %v741_v44 = vperm.slane %v733_v29, %v2025_v60 }
 0x22e   :  { %v746_v45 = vrot.slane %v737_v39, 4  ;;  %v1750_v46 = vunpack.i.h.bf16 %v1748_v34  ;;  %v1749_v47 = vunpack.i.l.bf16 %v1748_v34  ;;  %v1730_v48 = vunpack.i.h.bf16 %v1728_v35 }
 0x22f   :  { %v742_v61 = vrot.slane %v2224_v41, 4  ;;  %v2229_v62 = vrot.slane %v729_v43, 4  ;;  %v748_v13 = vrot.slane %v741_v44, 4  ;;  %v1729_v15 = vunpack.i.l.bf16 %v1728_v35 }
 0x230   :  { %v2232_v6 = vsel %vm190_vm8, 0.0, %v746_v45  ;;  %v762_v16 = vrot.slane %v1750_v46, 4  ;;  %v750_v5 = vrot.slane %v1749_v47, 4  ;;  %v753_v17 = vsel %vm190_vm8, %v1749_v47, %v2170_v24 }
 0x231   :  { %v2237_v18 = vsel %vm190_vm8, 0.0, %v742_v61  ;;  %v2241_v20 = vsel %vm190_vm8, 0.0, %v2229_v62  ;;  %v2244_v21 = vsel %vm190_vm8, 0.0, %v748_v13  ;;  %v817_v25 = vsel %vm190_vm8, %v748_v13, %v737_v39 }
 0x232   :  { %v811_v27 = vrot.slane %v2241_v20, 4  ;;  %v2249_v28 = vperm.slane %v817_v25, %v2019_v52  ;;  %v822_v29 = vrot.slane %v2244_v21, 4  ;;  %v751_v24 = vsel %vm190_vm8, %v750_v5, %v1744_v8 }
 0x233   :  { %v757_v34 = vperm.slane %v751_v24, %v2019_v52  ;;  %v761_v35 = vperm.slane %v753_v17, %v2019_v52  ;;  %v763_v37 = vsel %vm190_vm8, %v762_v16, %v1745_v7  ;;  %v765_v38 = vsel %vm190_vm8, %v1750_v46, %v2166_v23 }
 0x234   :  { %v769_v39 = vperm.slane %v763_v37, %v2019_v52  ;;  %v773_v43 = vperm.slane %v765_v38, %v2019_v52  ;;  %v510_v44 = vrot.slane %v1730_v48, 4  ;;  %v498_v45 = vrot.slane %v1729_v15, 4 }
 0x235   :  { %v776_v47 = vrot.slane %v757_v34, 4  ;;  %v788_v61 = vrot.slane %v761_v35, 4  ;;  %v501_v8 = vsel %vm190_vm8, %v1729_v15, %v2162_v14  ;;  %v513_v13 = vsel %vm190_vm8, %v1730_v48, %v2158_v55 }
 0x236   :  { %v774_v49 = vrot.slane %v769_v39, 4  ;;  %v786_v5 = vrot.slane %v773_v43, 4  ;;  %v499_v7 = vsel %vm190_vm8, %v498_v45, %v1724_v0  ;;  %v509_v23 = vperm.slane %v501_v8, %v2019_v52 }
 0x237   :  { %v777_v46 = vsel %vm190_vm8, %v769_v39, %v776_v47  ;;  %v789_v16 = vsel %vm190_vm8, %v773_v43, %v788_v61  ;;  %v505_v17 = vperm.slane %v499_v7, %v2019_v52  ;;  %v511_v14 = vsel %vm190_vm8, %v510_v44, %v1725_v63 }
 0x238   :  { %v775_v55 = vsel %vm190_vm8, %v774_v49, %v757_v34  ;;  %v785_v48 = vperm.slane %v777_v46, %v2025_v60  ;;  %v787_v15 = vsel %vm190_vm8, %v786_v5, %v761_v35  ;;  %v797_v0 = vperm.slane %v789_v16, %v2025_v60 }
 0x239   :  { %v2283_v25 = vperm.slane %v775_v55, %v2025_v60  ;;  %v793_v24 = vperm.slane %v787_v15, %v2025_v60  ;;  %v517_v37 = vperm.slane %v511_v14, %v2019_v52  ;;  %v521_v38 = vperm.slane %v513_v13, %v2019_v52 }
 0x23a   :  { %v2288_v26 = vrot.slane %v785_v48, 4  ;;  %v804_v63 = vrot.slane %v797_v0, 4  ;;  %v524_v39 = vrot.slane %v505_v17, 4  ;;  %v536_v34 = vrot.slane %v509_v23, 4 }
 0x23b   :  { %v798_v43 = vrot.slane %v2283_v25, 4  ;;  %v802_v44 = vrot.slane %v793_v24, 4  ;;  %v522_v35 = vrot.slane %v517_v37, 4  ;;  %v534_v45 = vrot.slane %v521_v38, 4 }
 0x23c   :  { %v2293_v47 = vsel %vm190_vm8, 0.0, %v2288_v26  ;;  %v2296_v61 = vsel %vm190_vm8, 0.0, %v804_v63  ;;  %v871_v8 = vsel %vm190_vm8, %v804_v63, %v793_v24  ;;  %v525_v13 = vsel %vm190_vm8, %v517_v37, %v524_v39 }
 0x23d   :  { %v2301_v49 = vsel %vm190_vm8, 0.0, %v798_v43  ;;  %v2304_v5 = vsel %vm190_vm8, 0.0, %v802_v44  ;;  %v865_v7 = vrot.slane %v2293_v47, 4  ;;  %v2308_v46 = vperm.slane %v871_v8, %v2019_v52 }
 0x23e   :  { %v876_v16 = vrot.slane %v2296_v61, 4  ;;  %v523_v14 = vsel %vm190_vm8, %v522_v35, %v505_v17  ;;  %v533_v55 = vperm.slane %v525_v13, %v2025_v60  ;;  %v535_v48 = vsel %vm190_vm8, %v534_v45, %v509_v23 }
 0x23f   :  { %v529_v15 = vperm.slane %v523_v14, %v2025_v60  ;;  %v537_v0 = vsel %vm190_vm8, %v521_v38, %v536_v34  ;;  %v541_v24 = vperm.slane %v535_v48, %v2025_v60  ;;  %v491_v37 = vsel %vm190_vm8, 0.0, %v490_v30 }
 0x240   :  { %v545_v63 = vperm.slane %v537_v0, %v2025_v60  ;;  %v548_v39 = vrot.slane %v533_v55, 4  ;;  %v554_v17 = vsel %vm190_vm8, %v2206_v31, %v2197_v19  ;;  %v559_v43 = vrot.slane %v2221_v40, 4 }
 0x241   :  { %v546_v23 = vrot.slane %v529_v15, 4  ;;  %v550_v44 = vrot.slane %v541_v24, 4  ;;  %v558_v35 = vperm.slane %v554_v17, %v2019_v52  ;;  %v565_v38 = vsel %vm190_vm8, %v2201_v22, %v2189_v12 }
 0x242   :  { %v549_v34 = vsel %vm190_vm8, 0.0, %v548_v39  ;;  %v552_v30 = vrot.slane %v545_v63, 4  ;;  %v560_v45 = vsel %vm190_vm8, %v559_v43, %v491_v37  ;;  %v569_v8 = vperm.slane %v565_v38, %v2019_v52 }
 0x243   :  { %v551_v13 = vsel %vm190_vm8, 0.0, %v550_v44  ;;  %v613_v19 = vrot.slane %v549_v34, 4  ;;  %v564_v31 = vperm.slane %v560_v45, %v2019_v52  ;;  %v571_v40 = vsel %vm190_vm8, %v570_v36, %v2209_v32 }
 0x244   :  { %v553_v14 = vsel %vm190_vm8, 0.0, %v552_v30  ;;  %v619_v12 = vsel %vm190_vm8, %v552_v30, %v541_v24  ;;  %v575_v22 = vperm.slane %v571_v40, %v2019_v52  ;;  %v578_v55 = vrot.slane %v558_v35, 4 }
 0x245   :  { %v624_v48 = vrot.slane %v553_v14, 4  ;;  %v590_v0 = vrot.slane %v569_v8, 4  ;;  %v576_v37 = vrot.slane %v564_v31, 4  ;;  %v547_v43 = vsel %vm190_vm8, 0.0, %v546_v23 }
 0x246   :  { %v579_v63 = vsel %vm190_vm8, %v564_v31, %v578_v55  ;;  %v588_v17 = vrot.slane %v575_v22, 4  ;;  %v608_v33 = vsel %vm190_vm8, %v548_v39, %v529_v15  ;;  %v614_v45 = vsel %vm190_vm8, %v613_v19, %v547_v43 }
 0x247   :  { %v587_v32 = vperm.slane %v579_v63, %v2025_v60  ;;  %v591_v36 = vsel %vm190_vm8, %v575_v22, %v590_v0  ;;  %v577_v24 = vsel %vm190_vm8, %v576_v37, %v558_v35  ;;  %v612_v44 = vperm.slane %v608_v33, %v2019_v52 }
 0x248   :  { %v599_v38 = vperm.slane %v591_v36, %v2025_v60  ;;  %v583_v34 = vperm.slane %v577_v24, %v2025_v60  ;;  %v589_v30 = vsel %vm190_vm8, %v588_v17, %v569_v8  ;;  %v618_v15 = vperm.slane %v614_v45, %v2019_v52 }
 0x249   :  { %v595_v23 = vperm.slane %v589_v30, %v2025_v60  ;;  %v606_v31 = vrot.slane %v587_v32, 4  ;;  %v623_v39 = vperm.slane %v619_v12, %v2019_v52  ;;  %v625_v35 = vsel %vm190_vm8, %v624_v48, %v551_v13 }
 0x24a   :  { %v604_v40 = vrot.slane %v599_v38, 4  ;;  %v602_v14 = vrot.slane %v583_v34, 4  ;;  %v632_v22 = vrot.slane %v612_v44, 4  ;;  %v629_v37 = vperm.slane %v625_v35, %v2019_v52 }
 0x24b   :  { %v600_v55 = vrot.slane %v595_v23, 4  ;;  %v607_v0 = vsel %vm190_vm8, %v599_v38, %v606_v31  ;;  %v644_v8 = vrot.slane %v623_v39, 4  ;;  %v860_v59 = vsel %vm190_vm8, %v2288_v26, %v2283_v25 }
 0x24c   :  { %v605_v19 = vsel %vm190_vm8, %v604_v40, %v587_v32  ;;  %v665_v63 = vpack.c.bf16 %v607_v0, %v607_v0  ;;  %v603_v17 = vsel %vm190_vm8, %v595_v23, %v602_v14  ;;  %v633_v43 = vsel %vm190_vm8, %v618_v15, %v632_v22 }
 0x24d   :  { %v664_v33 = vpack.c.bf16 %v605_v19, %v605_v19  ;;  %v601_v12 = vsel %vm190_vm8, %v600_v55, %v583_v34  ;;  %v663_v36 = vpack.c.bf16 %v603_v17, %v603_v17  ;;  %v641_v13 = vperm.slane %v633_v43, %v2025_v60 }
 0x24e   :  { %v662_v48 = vpack.c.bf16 %v601_v12, %v601_v12  ;;  %v988_v24 = vsel %vm926_vm9, %v665_v63, 0  ;;  %v645_v38 = vsel %vm190_vm8, %v629_v37, %v644_v8  ;;  %v806_v32 = vsel %vm190_vm8, %v2229_v62, %v2224_v41 }
 0x24f   :  { %v969_v30 = vsel %vm926_vm9, %v664_v33, 0  ;;  %997 = vmatpush.bf16.xpose.msrb.mxu0 %v988_v24  ;;  %v950_v45 = vsel %vm926_vm9, %v663_v36, 0  ;;  %v653_v23 = vperm.slane %v645_v38, %v2025_v60  ;;  %v660_v34 = vrot.slane %v641_v13, 4 }
 0x250   :  { %978 = vmatpush.bf16.xpose.msra.mxu3 %v969_v30  ;;  %v931_v31 = vsel %vm926_vm9, %v662_v48, 0  ;;  %959 = vmatpush.bf16.xpose.msra.mxu2 %v950_v45  ;;  %v810_v40 = vperm.slane %v806_v32, %v2019_v52  ;;  %v812_v14 = vsel %vm190_vm8, %v811_v27, %v2237_v18  ;;  %v823_v41 = vsel %vm190_vm8, %v822_v29, %v2232_v6 }
 0x251   :  { %940 = vmatpush.bf16.xpose.msra.mxu1 %v931_v31  ;;  %v658_v62 = vrot.slane %v653_v23, 4  ;;  %v816_v35 = vperm.slane %v812_v14, %v2019_v52  ;;  %v827_v22 = vperm.slane %v823_v41, %v2019_v52  ;;  %v842_v55 = vrot.slane %v2249_v28, 4 }
 0x252   :  { %v830_v0 = vrot.slane %v810_v40, 4  ;;  %v630_v8 = vrot.slane %v618_v15, 4  ;;  %v642_v19 = vrot.slane %v629_v37, 4  ;;  %v661_v21 = vsel %vm190_vm8, %v653_v23, %v660_v34 }
 0x253   :  { %v659_v20 = vsel %vm190_vm8, %v658_v62, %v641_v13  ;;  %v843_v18 = vsel %vm190_vm8, %v827_v22, %v842_v55  ;;  %v828_v27 = vrot.slane %v816_v35, 4  ;;  %v669_v37 = vpack.c.bf16 %v661_v21, %v661_v21 }
 0x254   :  { %v668_v6 = vpack.c.bf16 %v659_v20, %v659_v20  ;;  %v831_v29 = vsel %vm190_vm8, %v816_v35, %v830_v0  ;;  %v851_v63 = vperm.slane %v843_v18, %v2025_v60  ;;  %v631_v17 = vsel %vm190_vm8, %v630_v8, %v612_v44 }
 0x255   :  { %v839_v43 = vperm.slane %v831_v29, %v2025_v60  ;;  %v637_v33 = vperm.slane %v631_v17, %v2025_v60  ;;  %v643_v15 = vsel %vm190_vm8, %v642_v19, %v623_v39  ;;  %v829_v48 = vsel %vm190_vm8, %v828_v27, %v810_v40 }
 0x256   :  { %v1045_v12 = vsel %vm926_vm9, %v668_v6, 0  ;;  %1667 = vmatmul.msk.bf16.vlgmr.msrb.gmra.mxu0 %vm926_vm9, %v413_v3  ;;  %v856_v36 = vrot.slane %v851_v63, 4  ;;  %v649_v13 = vperm.slane %v643_v15, %v2025_v60  ;;  %v1064_v44 = vsel %vm926_vm9, %v669_v37, 0 }
 0x257   :  { %1666 = vmatmul.msk.bf16.vlgmr.msra.gmra.mxu3 %vm926_vm9, %v412_v1  ;;  %1665 = vmatmul.msk.bf16.vlgmr.msra.gmra.mxu2 %vm926_vm9, %v411_v4  ;;  %v835_v53 = vperm.slane %v829_v48, %v2025_v60  ;;  %v840_v3 = vrot.slane %v827_v22, 4  ;;  %v858_v39 = vrot.slane %v839_v43, 4  ;;  %v656_v24 = vrot.slane %v637_v33, 4 }
 0x258   :  { %1054 = vmatpush.bf16.xpose.msrb.mxu3 %v1045_v12  ;;  %1664 = vmatmul.msk.bf16.vlgmr.msra.gmra.mxu1 %vm926_vm9, %v410_v2  ;;  %v857_v54 = vsel %vm190_vm8, %v856_v36, %v839_v43  ;;  %v654_v1 = vrot.slane %v649_v13, 4  ;;  %v864_v25 = vperm.slane %v860_v59, %v2019_v52  ;;  %v866_v41 = vsel %vm190_vm8, %v865_v7, %v2301_v49 }
 0x259   :  { %v916_v38 = vpack.c.bf16 %v857_v54, %v857_v54  ;;  %1073 = vmatpush.bf16.xpose.msra.mxu0 %v1064_v44  ;;  %v841_v4 = vsel %vm190_vm8, %v840_v3, %v2249_v28  ;;  %v859_v32 = vsel %vm190_vm8, %v851_v63, %v858_v39  ;;  %v854_v30 = vrot.slane %v835_v53, 4 }
 0x25a   :  { %v655_v58 = vsel %vm190_vm8, %v654_v1, %v637_v33  ;;  %v847_v2 = vperm.slane %v841_v4, %v2025_v60  ;;  %v917_v45 = vpack.c.bf16 %v859_v32, %v859_v32  ;;  %v657_v23 = vsel %vm190_vm8, %v649_v13, %v656_v24 }
 0x25b   :  { %v1218_v34 = vsel %vm1178_vm10, %v916_v38, 0  ;;  %v666_v31 = vpack.c.bf16 %v655_v58, %v655_v58  ;;  %v667_v40 = vpack.c.bf16 %v657_v23, %v657_v23  ;;  %v870_v55 = vperm.slane %v866_v41, %v2019_v52  ;;  %v922_v38 = vld [vmem:[#allocation5] sm:$0xff]  ;;  %v924_v58 = vld [vmem:[#allocation5 + $0x10] sm:$0xff]  ;;  %v925_v41 = vld [vmem:[#allocation5 + $0x18] sm:$0xff] }
 0x25c   :  { %v852_v26 = vrot.slane %v847_v2, 4  ;;  %v1237_v28 = vsel %vm1178_vm10, %v917_v45, 0  ;;  %v855_v14 = vsel %vm190_vm8, %v847_v2, %v854_v30  ;;  %v877_v8 = vsel %vm190_vm8, %v876_v16, %v2304_v5  ;;  %v923_v45 = vld [vmem:[#allocation5 + $0x8] sm:$0xff] }
 0x25d   :  { %v1007_v62 = vsel %vm926_vm9, %v666_v31, 0  ;;  %v1026_v35 = vsel %vm926_vm9, %v667_v40, 0  ;;  %v915_v22 = vpack.c.bf16 %v855_v14, %v855_v14  ;;  %v884_v47 = vrot.slane %v864_v25, 4 }
 0x25e   :  { %1016 = vmatpush.bf16.xpose.msrb.mxu1 %v1007_v62  ;;  %v853_v0 = vsel %vm190_vm8, %v852_v26, %v835_v53  ;;  %1035 = vmatpush.bf16.xpose.msrb.mxu2 %v1026_v35  ;;  %v896_v49 = vrot.slane %v2308_v46, 4  ;;  %v881_v20 = vperm.slane %v877_v8, %v2019_v52  ;;  %v882_v18 = vrot.slane %v870_v55, 4 }
 0x25f   :  { %v914_v7 = vpack.c.bf16 %v853_v0, %v853_v0  ;;  %v1199_v19 = vsel %vm1178_vm10, %v915_v22, 0  ;;  %v407_v21 = vsel %vm190_vm8, %v406_v9, %v2125_v50  ;;  %v885_v27 = vsel %vm190_vm8, %v870_v55, %v884_v47 }
 0x260   :  { %1227 = vmatpush.bf16.msra.mxu3 %v1218_v34  ;;  %v409_v61 = vsel %vm190_vm8, %v2128_v51, %v408_v10  ;;  %v893_v16 = vperm.slane %v885_v27, %v2025_v60  ;;  %v897_v6 = vsel %vm190_vm8, %v881_v20, %v896_v49  ;;  %v883_v29 = vsel %vm190_vm8, %v882_v18, %v864_v25 }
 0x261   :  { %1246 = vmatpush.bf16.msrb.mxu0 %v1237_v28  ;;  %v1180_v5 = vsel %vm1178_vm10, %v914_v7, 0  ;;  %v905_v63 = vperm.slane %v897_v6, %v2025_v60  ;;  %v889_v9 = vperm.slane %v883_v29, %v2025_v60  ;;  %v894_v17 = vrot.slane %v881_v20, 4 }
 0x262   :  { %v405_v50 = vsel %vm190_vm8, %v2134_v57, %v404_v42  ;;  %v403_v51 = vsel %vm190_vm8, %v402_v11, %v2131_v56  ;;  %v912_v10 = vrot.slane %v893_v16, 4  ;;  %v417_v33 = vpack.c.bf16 %v409_v61, %v409_v61 }
 0x263   :  { %v910_v43 = vrot.slane %v905_v63, 4  ;;  %v895_v15 = vsel %vm190_vm8, %v894_v17, %v2308_v46  ;;  %v908_v37 = vrot.slane %v889_v9, 4  ;;  %v416_v12 = vpack.c.bf16 %v407_v21, %v407_v21 }
 0x264   :  { %v901_v36 = vperm.slane %v895_v15, %v2025_v60  ;;  %v913_v13 = vsel %vm190_vm8, %v905_v63, %v912_v10  ;;  %v415_v48 = vpack.c.bf16 %v405_v50, %v405_v50  ;;  %v414_v44 = vpack.c.bf16 %v403_v51, %v403_v51 }
 0x265   :  { %v911_v42 = vsel %vm190_vm8, %v910_v43, %v893_v16  ;;  %v921_v57 = vpack.c.bf16 %v913_v13, %v913_v13 }
 0x266   :  { %1208 = vmatpush.bf16.msra.mxu2 %v1199_v19  ;;  %1189 = vmatpush.bf16.msra.mxu1 %v1180_v5  ;;  %v920_v56 = vpack.c.bf16 %v911_v42, %v911_v42  ;;  %v906_v11 = vrot.slane %v901_v36, 4  ;;  %v909_v46 = vsel %vm190_vm8, %v901_v36, %v908_v37 }
 0x267   :  { %1671 = vmatmul.msk.bf16.vlgmr.msra.gmra.mxu0 %vm926_vm9, %v417_v33  ;;  %1670 = vmatmul.msk.bf16.vlgmr.msrb.gmra.mxu3 %vm926_vm9, %v416_v12  ;;  %v1313_v53 = vsel %vm1178_vm10, %v921_v57, 0  ;;  %v919_v3 = vpack.c.bf16 %v909_v46, %v909_v46 }
 0x268   :  { %1669 = vmatmul.msk.bf16.vlgmr.msrb.gmra.mxu2 %vm926_vm9, %v415_v48  ;;  %1668 = vmatmul.msk.bf16.vlgmr.msrb.gmra.mxu1 %vm926_vm9, %v414_v44  ;;  %v1294_v39 = vsel %vm1178_vm10, %v920_v56, 0  ;;  %v907_v54 = vsel %vm190_vm8, %v906_v11, %v889_v9 }
 0x269   :  { %1322 = vmatpush.bf16.msra.mxu0 %v1313_v53  ;;  %1303 = vmatpush.bf16.msrb.mxu3 %v1294_v39  ;;  %v918_v1 = vpack.c.bf16 %v907_v54, %v907_v54  ;;  %v1275_v24 = vsel %vm1178_vm10, %v919_v3, 0 }
 0x26a   :  { %1284 = vmatpush.bf16.msrb.mxu2 %v1275_v24 }
 0x26b   :  { %v1256_v59 = vsel %vm1178_vm10, %v918_v1, 0 }
 0x26c   :  { %1265 = vmatpush.bf16.msrb.mxu1 %v1256_v59 }
 0x2d3   :  { %v999_v4 = vpop.f32.mrf.mxu0 }
 0x2d4   :  { %v1000_v62 = vadd.f32 %v999_v4, %v925_v41 }
 0x2d5   :  { %v942_v32 = vpop.f32.mrf.mxu1 }
 0x2d6   :  { %v943_v30 = vadd.f32 %v942_v32, %v922_v38  ;;  %v1088_v0 = vsel %vm926_vm9, %v1000_v62, -inf }
 0x2d8   :  { %v1079_v2 = vsel %vm926_vm9, %v943_v30, -inf }
 0x2d9   :  { %1080 = vmax.xlane.f32.xlu0 %v1079_v2 }
 0x2da   :  { %v980_v23 = vpop.f32.mrf.mxu3  ;;  %v961_v34 = vpop.f32.mrf.mxu2 }
 0x2db   :  { %v981_v31 = vadd.f32 %v980_v23, %v924_v58  ;;  %v1001_v40 = vpop.f32.mrf.mxu0  ;;  %v962_v25 = vadd.f32 %v961_v34, %v923_v45 }
 0x2dd   :  { %v1085_v26 = vsel %vm926_vm9, %v981_v31, -inf  ;;  %v944_v28 = vpop.f32.mrf.mxu1  ;;  %v1082_v14 = vsel %vm926_vm9, %v962_v25, -inf }
 0x2de   :  { %1086 = vmax.xlane.f32.xlu1 %v1085_v26  ;;  %1083 = vmax.xlane.f32.xlu2 %v1082_v14 }
 0x2e2   :  { %v982_v35 = vpop.f32.mrf.mxu3  ;;  %v963_v22 = vpop.f32.mrf.mxu2 }
 0x2e4   :  { %v1075_v55 = vpop.f32.mrf.mxu0 }
 0x2e5   :  { %v1018_v8 = vpop.f32.mrf.mxu1  ;;  %v1076_v16 = vadd.f32 %v1075_v55, %v925_v41 }
 0x2e6   :  { %1089 = vmax.xlane.f32.xlu1 %v1088_v0  ;;  %v1019_v47 = vadd.f32 %v1018_v8, %v922_v38 }
 0x2e7   :  { %v1100_v63 = vsel %vm926_vm9, %v1076_v16, -inf }
 0x2e8   :  { %v1091_v49 = vsel %vm926_vm9, %v1019_v47, -inf }
 0x2e9   :  { %1092 = vmax.xlane.f32.xlu0 %v1091_v49 }
 0x2ea   :  { %v1056_v7 = vpop.f32.mrf.mxu3 }
 0x2eb   :  { %v1037_v19 = vpop.f32.mrf.mxu2  ;;  %v1057_v20 = vadd.f32 %v1056_v7, %v924_v58 }
 0x2ec   :  { %v1077_v18 = vpop.f32.mrf.mxu0  ;;  %v1038_v21 = vadd.f32 %v1037_v19, %v923_v45 }
 0x2ed   :  { %v1097_v27 = vsel %vm926_vm9, %v1057_v20, -inf  ;;  %v1020_v61 = vpop.f32.mrf.mxu1 }
 0x2ee   :  { %v1094_v5 = vsel %vm926_vm9, %v1038_v21, -inf  ;;  %1098 = vmax.xlane.f32.xlu2 %v1097_v27 }
 0x2ef   :  { %1095 = vmax.xlane.f32.xlu1 %v1094_v5 }
 0x2f2   :  { %v1058_v6 = vpop.f32.mrf.mxu3 }
 0x2f3   :  { %v1039_v29 = vpop.f32.mrf.mxu2 }
 0x2f6   :  { %1101 = vmax.xlane.f32.xlu2 %v1100_v63 }
 0x34c   :  { %v1081_v9 = vpop.xlane.xlu0 %1080 }
 0x34d   :  { %v1103_v17 = vmax.f32 %v1081_v9, -1e+30 }
 0x34f   :  { %v1111_v50 = vsub.f32 %v943_v30, %v1103_v17 }
 0x351   :  { %v1119_v51 = vmul.f32 1.442695, %v1111_v50  ;;  %v1087_v10 = vpop.xlane.xlu1 %1086  ;;  %v1084_v43 = vpop.xlane.xlu2 %1083 }
 0x352   :  { %v1105_v33 = vmax.f32 %v1087_v10, -1e+30  ;;  %v1104_v15 = vmax.f32 %v1084_v43, -1e+30 }
 0x353   :  { %1773 = vpow2.f32 %v1119_v51 }
 0x354   :  { %v1113_v37 = vsub.f32 %v981_v31, %v1105_v33  ;;  %v1112_v12 = vsub.f32 %v962_v25, %v1104_v15 }
 0x356   :  { %v1123_v36 = vmul.f32 1.442695, %v1113_v37  ;;  %v1121_v13 = vmul.f32 1.442695, %v1112_v12 }
 0x358   :  { %1775 = vpow2.f32 %v1123_v36 }
 0x359   :  { %v1774_v48 = vpop.eup %1773  ;;  %1777 = vpow2.f32 %v1121_v13  ;;  %v1090_v42 = vpop.xlane.xlu1 %1089 }
 0x35a   :  { %v1167_v44 = vpack.c.bf16 %v1774_v48, %v1774_v48  ;;  %v1106_v57 = vmax.f32 %v1090_v42, -1e+30  ;;  %v1135_v56 = vsel %vm926_vm9, %v1774_v48, 0.0 }
 0x35b   :  { %1136 = vadd.xlane.f32.xlu2 %v1135_v56 }
 0x35c   :  { %v1114_v11 = vsub.f32 %v1000_v62, %v1106_v57  ;;  %1672 = vmatmul.msk.bf16.vlgmr.msra.gmra.mxu1 %vm926_vm9, %v1167_v44  ;;  %v1093_v46 = vpop.xlane.xlu0 %1092 }
 0x35d   :  { %v1107_v53 = vmax.f32 %v1093_v46, -1e+30 }
 0x35e   :  { %v1776_v3 = vpop.eup %1775  ;;  %v1125_v39 = vmul.f32 1.442695, %v1114_v11 }
 0x35f   :  { %v1778_v54 = vpop.eup %1777  ;;  %v1169_v1 = vpack.c.bf16 %v1776_v3, %v1776_v3  ;;  %v1115_v24 = vsub.f32 %v1019_v47, %v1107_v53  ;;  %v1141_v47 = vsel %vm926_vm9, %v1776_v3, 0.0 }
 0x360   :  { %v1168_v59 = vpack.c.bf16 %v1778_v54, %v1778_v54  ;;  %1779 = vpow2.f32 %v1125_v39 }
 0x361   :  { %v1127_v38 = vmul.f32 1.442695, %v1115_v24  ;;  %1674 = vmatmul.msk.bf16.vlgmr.msra.gmra.mxu3 %vm926_vm9, %v1169_v1  ;;  %v1099_v4 = vpop.xlane.xlu2 %1098 }
 0x362   :  { %v1096_v32 = vpop.xlane.xlu1 %1095  ;;  %v1109_v30 = vmax.f32 %v1099_v4, -1e+30  ;;  %1673 = vmatmul.msk.bf16.vlgmr.msra.gmra.mxu2 %vm926_vm9, %v1168_v59 }
 0x363   :  { %v1108_v58 = vmax.f32 %v1096_v32, -1e+30  ;;  %1781 = vpow2.f32 %v1127_v38 }
 0x364   :  { %v1117_v2 = vsub.f32 %v1057_v20, %v1109_v30 }
 0x365   :  { %v1116_v45 = vsub.f32 %v1038_v21, %v1108_v58  ;;  %v1138_v21 = vsel %vm926_vm9, %v1778_v54, 0.0 }
 0x366   :  { %v1780_v23 = vpop.eup %1779  ;;  %v1131_v34 = vmul.f32 1.442695, %v1117_v2 }
 0x367   :  { %v1129_v31 = vmul.f32 1.442695, %v1116_v45  ;;  %v1170_v40 = vpack.c.bf16 %v1780_v23, %v1780_v23  ;;  %v1144_v25 = vsel %vm926_vm9, %v1780_v23, 0.0 }
 0x368   :  { %1783 = vpow2.f32 %v1131_v34  ;;  %1145 = vadd.xlane.f32.xlu1 %v1144_v25 }
 0x369   :  { %v1782_v26 = vpop.eup %1781  ;;  %1785 = vpow2.f32 %v1129_v31  ;;  %1675 = vmatmul.msk.bf16.vlgmr.msrb.gmra.mxu0 %vm926_vm9, %v1170_v40  ;;  %v1102_v28 = vpop.xlane.xlu2 %1101 }
 0x36a   :  { %v1171_v14 = vpack.c.bf16 %v1782_v26, %v1782_v26  ;;  %v1110_v41 = vmax.f32 %v1102_v28, -1e+30  ;;  %v1147_v62 = vsel %vm926_vm9, %v1782_v26, 0.0 }
 0x36b   :  { %1148 = vadd.xlane.f32.xlu0 %v1147_v62 }
 0x36c   :  { %v1118_v35 = vsub.f32 %v1076_v16, %v1110_v41  ;;  %1676 = vmatmul.msk.bf16.vlgmr.msrb.gmra.mxu1 %vm926_vm9, %v1171_v14 }
 0x36e   :  { %v1784_v22 = vpop.eup %1783  ;;  %v1133_v55 = vmul.f32 1.442695, %v1118_v35 }
 0x36f   :  { %v1786_v0 = vpop.eup %1785  ;;  %v1173_v8 = vpack.c.bf16 %v1784_v22, %v1784_v22  ;;  %v1153_v7 = vsel %vm926_vm9, %v1784_v22, 0.0 }
 0x370   :  { %v1172_v49 = vpack.c.bf16 %v1786_v0, %v1786_v0  ;;  %1787 = vpow2.f32 %v1133_v55  ;;  %1142 = vadd.xlane.f32.xlu1 %v1141_v47  ;;  %v1150_v27 = vsel %vm926_vm9, %v1786_v0, 0.0 }
 0x371   :  { %1678 = vmatmul.msk.bf16.vlgmr.msrb.gmra.mxu3 %vm926_vm9, %v1173_v8 }
 0x372   :  { %1677 = vmatmul.msk.bf16.vlgmr.msrb.gmra.mxu2 %vm926_vm9, %v1172_v49 }
 0x373   :  { %1154 = vadd.xlane.f32.xlu0 %v1153_v7 }
 0x376   :  { %v1788_v19 = vpop.eup %1787 }
 0x377   :  { %v1174_v20 = vpack.c.bf16 %v1788_v19, %v1788_v19  ;;  %v1156_v18 = vsel %vm926_vm9, %v1788_v19, 0.0 }
 0x378   :  { %1157 = vadd.xlane.f32.xlu2 %v1156_v18  ;;  %1139 = vadd.xlane.f32.xlu1 %v1138_v21 }
 0x379   :  { %1679 = vmatmul.msk.bf16.vlgmr.msra.gmra.mxu0 %vm926_vm9, %v1174_v20 }
 0x37b   :  { %1151 = vadd.xlane.f32.xlu0 %v1150_v27 }
 0x3ce   :  { %v1137_v16 = vpop.xlane.xlu2 %1136 }
 0x3cf   :  { %v1159_v29 = vmax.f32 %v1137_v16, 1e-30 }
 0x3d1   :  { %1789 = vrcp.f32 %v1159_v29 }
 0x3d7   :  { %v1790_v37 = vpop.eup %1789 }
 0x3d9   :  { %v1191_v61 = vpop.f32.mrf.mxu1 }
 0x3da   :  { %v1336_v36 = vmul.f32 %v1790_v37, %v1191_v61 }
 0x3db   :  { %v1146_v5 = vpop.xlane.xlu1 %1145 }
 0x3dc   :  { %v1162_v15 = vmax.f32 %v1146_v5, 1e-30  ;;  %v1346_v3 = vrot.slane %v1336_v36, 4 }
 0x3de   :  { %v1149_v6 = vpop.xlane.xlu0 %1148 }
 0x3df   :  { %v1163_v10 = vmax.f32 %v1149_v6, 1e-30 }
 0x3e1   :  { %v1193_v63 = vpop.f32.mrf.mxu1 }
 0x3e3   :  { %v1143_v9 = vpop.xlane.xlu1 %1142 }
 0x3e4   :  { %v1161_v17 = vmax.f32 %v1143_v9, 1e-30  ;;  %v1229_v50 = vpop.f32.mrf.mxu3 }
 0x3e5   :  { %v1210_v51 = vpop.f32.mrf.mxu2 }
 0x3e6   :  { %1791 = vrcp.f32 %v1161_v17  ;;  %v1248_v43 = vpop.f32.mrf.mxu0  ;;  %v1155_v33 = vpop.xlane.xlu0 %1154 }
 0x3e7   :  { %1793 = vrcp.f32 %v1163_v10  ;;  %v1165_v13 = vmax.f32 %v1155_v33, 1e-30 }
 0x3e8   :  { %1795 = vrcp.f32 %v1162_v15 }
 0x3e9   :  { %v1267_v12 = vpop.f32.mrf.mxu1  ;;  %1797 = vrcp.f32 %v1165_v13 }
 0x3eb   :  { %v1158_v48 = vpop.xlane.xlu2 %1157  ;;  %v1140_v42 = vpop.xlane.xlu1 %1139 }
 0x3ec   :  { %v1792_v44 = vpop.eup %1791  ;;  %v1166_v57 = vmax.f32 %v1158_v48, 1e-30  ;;  %v1160_v56 = vmax.f32 %v1140_v42, 1e-30  ;;  %v1231_v11 = vpop.f32.mrf.mxu3 }
 0x3ed   :  { %v1338_v46 = vmul.f32 %v1792_v44, %v1229_v50  ;;  %v1212_v53 = vpop.f32.mrf.mxu2  ;;  %v1794_v59 = vpop.eup %1793 }
 0x3ee   :  { %v1250_v39 = vpop.f32.mrf.mxu0  ;;  %v1152_v54 = vpop.xlane.xlu0 %1151  ;;  %1799 = vrcp.f32 %v1160_v56  ;;  %v1340_v32 = vmul.f32 %v1794_v59, %v1267_v12 }
 0x3ef   :  { %v1344_v1 = vrot.slane %v1338_v46, 4  ;;  %v1164_v24 = vmax.f32 %v1152_v54, 1e-30  ;;  %v1347_v38 = vsel %vm190_vm8, %v1338_v46, %v1346_v3  ;;  %1801 = vrcp.f32 %v1166_v57  ;;  %v1796_v4 = vpop.eup %1795 }
 0x3f0   :  { %v1339_v2 = vmul.f32 %v1796_v4, %v1248_v43  ;;  %v1355_v45 = vperm.slane %v1347_v38, %v2019_v52  ;;  %v1798_v23 = vpop.eup %1797  ;;  %v1402_v25 = vrot.slane %v1340_v32, 4 }
 0x3f1   :  { %1803 = vrcp.f32 %v1164_v24  ;;  %v1269_v30 = vpop.f32.mrf.mxu1  ;;  %v1345_v58 = vsel %vm190_vm8, %v1344_v1, %v1336_v36 }
 0x3f2   :  { %v1351_v40 = vperm.slane %v1345_v58, %v2019_v52  ;;  %v1356_v41 = vrot.slane %v1339_v2, 4  ;;  %v1382_v55 = vrot.slane %v1355_v45, 4 }
 0x3f4   :  { %v1305_v34 = vpop.f32.mrf.mxu3  ;;  %v1800_v31 = vpop.eup %1799  ;;  %v1370_v18 = vrot.slane %v1351_v40, 4 }
 0x3f5   :  { %v1342_v26 = vmul.f32 %v1798_v23, %v1305_v34  ;;  %v1286_v28 = vpop.f32.mrf.mxu2  ;;  %v1802_v14 = vpop.eup %1801  ;;  %v1337_v62 = vmul.f32 %v1800_v31, %v1210_v51 }
 0x3f6   :  { %v1324_v35 = vpop.f32.mrf.mxu0 }
 0x3f7   :  { %v1804_v22 = vpop.eup %1803  ;;  %v1400_v0 = vrot.slane %v1342_v26, 4  ;;  %v1403_v8 = vsel %vm190_vm8, %v1342_v26, %v1402_v25  ;;  %v1343_v47 = vmul.f32 %v1802_v14, %v1324_v35  ;;  %v1357_v49 = vsel %vm190_vm8, %v1356_v41, %v1337_v62 }
 0x3f8   :  { %v1358_v7 = vrot.slane %v1337_v62, 4  ;;  %v1411_v19 = vperm.slane %v1403_v8, %v2019_v52  ;;  %v1341_v20 = vmul.f32 %v1804_v22, %v1286_v28  ;;  %v1363_v21 = vperm.slane %v1357_v49, %v2019_v52 }
 0x3f9   :  { %v1401_v27 = vsel %vm190_vm8, %v1400_v0, %v1340_v32  ;;  %v1412_v61 = vrot.slane %v1343_v47, 4 }
 0x3fa   :  { %v1359_v5 = vsel %vm190_vm8, %v1339_v2, %v1358_v7  ;;  %v1407_v16 = vperm.slane %v1401_v27, %v2019_v52  ;;  %v1438_v6 = vrot.slane %v1411_v19, 4  ;;  %v1414_v29 = vrot.slane %v1341_v20, 4 }
 0x3fb   :  { %v1367_v63 = vperm.slane %v1359_v5, %v2019_v52  ;;  %v1368_v9 = vrot.slane %v1363_v21, 4  ;;  %v1371_v17 = vsel %vm190_vm8, %v1363_v21, %v1370_v18  ;;  %v1413_v50 = vsel %vm190_vm8, %v1412_v61, %v1341_v20 }
 0x3fc   :  { %v1379_v51 = vperm.slane %v1371_v17, %v2025_v60  ;;  %v1426_v10 = vrot.slane %v1407_v16, 4  ;;  %v1415_v43 = vsel %vm190_vm8, %v1343_v47, %v1414_v29  ;;  %v1419_v33 = vperm.slane %v1413_v50, %v2019_v52  ;;  %v1307_v15 = vpop.f32.mrf.mxu3 }
 0x3fd   :  { %v1369_v37 = vsel %vm190_vm8, %v1368_v9, %v1351_v40  ;;  %v1380_v12 = vrot.slane %v1367_v63, 4  ;;  %v1383_v36 = vsel %vm190_vm8, %v1367_v63, %v1382_v55  ;;  %v1423_v13 = vperm.slane %v1415_v43, %v2019_v52  ;;  %v1288_v48 = vpop.f32.mrf.mxu2 }
 0x3fe   :  { %v1375_v42 = vperm.slane %v1369_v37, %v2025_v60  ;;  %v1391_v44 = vperm.slane %v1383_v36, %v2025_v60  ;;  %v1394_v57 = vrot.slane %v1379_v51, 4  ;;  %v1424_v56 = vrot.slane %v1419_v33, 4  ;;  %v1326_v11 = vpop.f32.mrf.mxu0 }
 0x3ff   :  { %v1381_v46 = vsel %vm190_vm8, %v1380_v12, %v1355_v45  ;;  %v1427_v53 = vsel %vm190_vm8, %v1419_v33, %v1426_v10  ;;  %v1436_v3 = vrot.slane %v1423_v13, 4  ;;  %v1439_v39 = vsel %vm190_vm8, %v1423_v13, %v1438_v6 }
 0x400   :  { %v1395_v54 = vsel %vm190_vm8, 0.0, %v1394_v57  ;;  %v1398_v1 = vrot.slane %v1391_v44, 4  ;;  %v1425_v24 = vsel %vm190_vm8, %v1424_v56, %v1407_v16  ;;  %v1435_v59 = vperm.slane %v1427_v53, %v2025_v60 }
 0x401   :  { %v1461_v38 = vrot.slane %v1395_v54, 4  ;;  %v1431_v4 = vperm.slane %v1425_v24, %v2025_v60  ;;  %v1437_v32 = vsel %vm190_vm8, %v1436_v3, %v1411_v19  ;;  %v1447_v30 = vperm.slane %v1439_v39, %v2025_v60 }
 0x402   :  { %v1443_v58 = vperm.slane %v1437_v32, %v2025_v60  ;;  %v1450_v2 = vrot.slane %v1435_v59, 4  ;;  %v1387_v45 = vperm.slane %v1381_v46, %v2025_v60  ;;  %v1392_v23 = vrot.slane %v1375_v42, 4 }
 0x403   :  { %v1448_v34 = vrot.slane %v1431_v4, 4  ;;  %v1454_v31 = vrot.slane %v1447_v30, 4  ;;  %v1399_v40 = vsel %vm190_vm8, 0.0, %v1398_v1  ;;  %v1456_v25 = vsel %vm190_vm8, %v1394_v57, %v1375_v42 }
 0x404   :  { %v1451_v26 = vsel %vm190_vm8, 0.0, %v1450_v2  ;;  %v1452_v28 = vrot.slane %v1443_v58, 4  ;;  %v1510_v14 = vsel %vm190_vm8, %v1450_v2, %v1431_v4  ;;  %v1393_v41 = vsel %vm190_vm8, 0.0, %v1392_v23 }
 0x405   :  { %v1449_v62 = vsel %vm190_vm8, 0.0, %v1448_v34  ;;  %v1455_v35 = vsel %vm190_vm8, 0.0, %v1454_v31  ;;  %v1514_v22 = vperm.slane %v1510_v14, %v2019_v52  ;;  %v1515_v55 = vrot.slane %v1451_v26, 4 }
 0x406   :  { %v1526_v0 = vrot.slane %v1455_v35, 4  ;;  %v1396_v8 = vrot.slane %v1387_v45, 4  ;;  %v1453_v47 = vsel %vm190_vm8, 0.0, %v1452_v28  ;;  %v1460_v49 = vperm.slane %v1456_v25, %v2019_v52 }
 0x407   :  { %v1462_v7 = vsel %vm190_vm8, %v1461_v38, %v1393_v41  ;;  %v1467_v19 = vsel %vm190_vm8, %v1398_v1, %v1387_v45  ;;  %v1472_v20 = vrot.slane %v1399_v40, 4  ;;  %v1516_v18 = vsel %vm190_vm8, %v1515_v55, %v1449_v62 }
 0x408   :  { %v1397_v21 = vsel %vm190_vm8, 0.0, %v1396_v8  ;;  %v1466_v27 = vperm.slane %v1462_v7, %v2019_v52  ;;  %v1471_v61 = vperm.slane %v1467_v19, %v2019_v52  ;;  %v1480_v5 = vrot.slane %v1460_v49, 4 }
 0x409   :  { %v1473_v16 = vsel %vm190_vm8, %v1472_v20, %v1397_v21  ;;  %v1520_v6 = vperm.slane %v1516_v18, %v2019_v52  ;;  %v1521_v29 = vsel %vm190_vm8, %v1454_v31, %v1443_v58  ;;  %v1527_v63 = vsel %vm190_vm8, %v1526_v0, %v1453_v47 }
 0x40a   :  { %v1477_v9 = vperm.slane %v1473_v16, %v2019_v52  ;;  %v1481_v17 = vsel %vm190_vm8, %v1466_v27, %v1480_v5  ;;  %v1492_v50 = vrot.slane %v1471_v61, 4  ;;  %v1525_v51 = vperm.slane %v1521_v29, %v2019_v52 }
 0x40b   :  { %v1489_v10 = vperm.slane %v1481_v17, %v2025_v60  ;;  %v1531_v43 = vperm.slane %v1527_v63, %v2019_v52  ;;  %v1534_v33 = vrot.slane %v1514_v22, 4  ;;  %v1478_v15 = vrot.slane %v1466_v27, 4 }
 0x40c   :  { %v1493_v37 = vsel %vm190_vm8, %v1477_v9, %v1492_v50  ;;  %v1546_v12 = vrot.slane %v1525_v51, 4  ;;  %v1490_v36 = vrot.slane %v1477_v9, 4  ;;  %v1532_v13 = vrot.slane %v1520_v6, 4  ;;  %v1805_v9 = vld [vmem:[#allocation2] sm:$0xff] }
 0x40d   :  { %v1501_v48 = vperm.slane %v1493_v37, %v2025_v60  ;;  %v1508_v42 = vrot.slane %v1489_v10, 4  ;;  %v1535_v44 = vsel %vm190_vm8, %v1520_v6, %v1534_v33  ;;  %v1479_v57 = vsel %vm190_vm8, %v1478_v15, %v1460_v49 }
 0x40e   :  { %v1543_v56 = vperm.slane %v1535_v44, %v2025_v60  ;;  %v1547_v11 = vsel %vm190_vm8, %v1531_v43, %v1546_v12  ;;  %v1485_v52 = vperm.slane %v1479_v57, %v2025_v60  ;;  %v1491_v46 = vsel %vm190_vm8, %v1490_v36, %v1471_v61 }
 0x40f   :  { %v1555_v53 = vperm.slane %v1547_v11, %v2025_v60  ;;  %v1506_v3 = vrot.slane %v1501_v48, 4  ;;  %v1497_v39 = vperm.slane %v1491_v46, %v2025_v60  ;;  %v1533_v1 = vsel %vm190_vm8, %v1532_v13, %v1514_v22  ;;  %v1692_v22 = vld [vmem:[#allocation8 + $0x8] sm:$0xff] }
 0x410   :  { %v1562_v54 = vrot.slane %v1543_v56, 4  ;;  %v1544_v24 = vrot.slane %v1531_v43, 4  ;;  %v1504_v4 = vrot.slane %v1485_v52, 4  ;;  %v1539_v32 = vperm.slane %v1533_v1, %v2025_v60  ;;  %1622 = vmatpush.bf16.msra.mxu1 %v1692_v22 }
 0x411   :  { %v1560_v59 = vrot.slane %v1555_v53, 4  ;;  %v1502_v38 = vrot.slane %v1497_v39, 4  ;;  %v1509_v30 = vsel %vm190_vm8, %v1501_v48, %v1508_v42  ;;  %v1507_v2 = vsel %vm190_vm8, %v1506_v3, %v1489_v10 }
 0x412   :  { %v1563_v58 = vsel %vm190_vm8, %v1555_v53, %v1562_v54  ;;  %v1545_v45 = vsel %vm190_vm8, %v1544_v24, %v1525_v51  ;;  %v1558_v40 = vrot.slane %v1539_v32, 4  ;;  %v1505_v28 = vsel %vm190_vm8, %v1497_v39, %v1504_v4  ;;  %v1806_v51 = vld [vmem:[#allocation2 + $0x8] sm:$0xff] }
 0x413   :  { %v1761_v23 = vpack.i.bf16 %v1563_v58, %v1509_v30  ;;  %v1561_v34 = vsel %vm190_vm8, %v1560_v59, %v1543_v56  ;;  %v1551_v31 = vperm.slane %v1545_v45, %v2025_v60  ;;  %v1503_v26 = vsel %vm190_vm8, %v1502_v38, %v1485_v52  ;;  %v1691_v60 = vld [vmem:[#allocation8] sm:$0xff] }
 0x414   :  { %v1756_v25 = vpack.i.bf16 %v1561_v34, %v1507_v2  ;;  %1623 = vmatpush.bf16.msra.mxu1 %v1691_v60 }
 0x415   :  { %1762 = vrot.lane.b32.xlu0 %v1761_v23, %s1950_s18  ;;  %v1556_v14 = vrot.slane %v1551_v31, 4  ;;  %v1559_v41 = vsel %vm190_vm8, %v1551_v31, %v1558_v40 }
 0x416   :  { %1757 = vrot.lane.b32.xlu1 %v1756_v25, %s1951_s19  ;;  %v1751_v62 = vpack.i.bf16 %v1559_v41, %v1505_v28 }
 0x417   :  { %v1557_v35 = vsel %vm190_vm8, %v1556_v14, %v1539_v32 }
 0x418   :  { %1752 = vrot.lane.b32.xlu2 %v1751_v62, %s1937_s27 }
 0x472   :  { %v1753_v55 = vpop.permute.xlu2 %1752 }
 0x473   :  { %v1755_v0 = vunpack.i.h.bf16 %v1753_v55  ;;  %v1754_v8 = vunpack.i.l.bf16 %v1753_v55 }
 0x475   :  { %v1588_v20 = vsel %vm926_vm9, %v1503_v26, %v1754_v8  ;;  %v1589_v18 = vsel %vm926_vm9, %v1557_v35, %v1755_v0 }
 0x487   :  { %v1763_v47 = vpop.permute.xlu0 %1762 }
 0x488   :  { %v1758_v49 = vpop.permute.xlu1 %1757  ;;  %v1765_v21 = vunpack.i.h.bf16 %v1763_v47  ;;  %v1764_v27 = vunpack.i.l.bf16 %v1763_v47 }
 0x489   :  { %v1760_v7 = vunpack.i.h.bf16 %v1758_v49  ;;  %v1759_v19 = vunpack.i.l.bf16 %v1758_v49 }
 0x48b   :  { %v1591_v61 = vsel %vm1590_vm11, %v1588_v20, %v1759_v19  ;;  %v1592_v5 = vsel %vm1590_vm11, %v1589_v18, %v1760_v7 }
 0x48c   :  { %v1594_v16 = vsel %vm1593_vm12, %v1591_v61, %v1764_v27  ;;  %v1595_v6 = vsel %vm1593_vm12, %v1592_v5, %v1765_v21 }
 0x48d   :  { %v1596_v29 = vpack.c.bf16 %v1595_v6, %v1594_v16 }
 0x48f   :  { %1688 = vmatmul.msk.bf16.vlgmr.msra.gmra.mxu1 %vm89_vm0, %v1596_v29 }
 0x50c   :  { %v1625_v63 = vpop.f32.mrf.mxu1 }
 0x50d   :  { %v1630_v17 = vadd.f32 %v1805_v9, %v1625_v63 }
 0x50f   :  { %1632 = vst.msk [vmem:[#allocation10] sm:$0xff] %vm89_vm0, %v1630_v17 }
 0x514   :  { %v1627_v50 = vpop.f32.mrf.mxu1 }
 0x515   :  { %v1631_v10 = vadd.f32 %v1806_v51, %v1627_v50 }
 0x517   :  { %1633 = vst.msk [vmem:[#allocation10 + $0x8] sm:$0xff] %vm89_vm0, %v1631_v10 }
 0x518   :  { %1646 = dma.vmem_to_hbm [thread:$0]  %s1639_s21, 256, %s1641_s24, [#allocation4], %s1936_s26, %s1936_s26, %s1937_s27  }
 0x519   :  { %1933 = dma.done.wait [#allocation4], 256  }
 0x51a   :  { %1934 = vsyncadd [#allocation4], 4294967040 }
 0x51b   :  { %1651 = vsyncpa [#allocation3], 1 }
 0x51c   :  { %1652 = vsyncpa [#allocation6], 1 }
 0x51d   :  { %1653 = vsyncpa [#allocation9], 1 }
 0x51e   :  { %1654 = vsyncpa [#allocation4], 1 }

</bundles_post_ra>
